<compile_context>
chip_gen: v7x
topology: tpu7x:2x2x1
jax: 0.10.0
libtpu: 0.0.40
codegen_flags: <defaults>
</compile_context>

<pallas_src>
import jax
import jax.numpy as jnp
from jax import lax
from jax.experimental import pallas as pl
from jax.experimental.pallas import tpu as pltpu

EPS = 1e-5  # PyTorch BatchNorm2d default eps


def _round_up(x, m):
    return ((x + m - 1) // m) * m


def _is_pow2(v):
    return v > 0 and (v & (v - 1)) == 0


# ---------------------------------------------------------------------------
# Fused Pallas kernel (lane-dense layout: activations are (C, N*H*W))
# ---------------------------------------------------------------------------
def _make_fused_kernel(H, W, cpi, cpo):
    """Kernel factory; H, W and padded channel counts are static."""

    def kernel(x_ref, w1_ref, w2c_ref, bnp_ref, o_ref, tap1_ref, rhs2_ref):
        x = x_ref[...]                         # (cpi, NHW) f32, lane-dense
        nhw = x.shape[1]
        inv_n = 1.0 / nhw

        # ---- spatial indices generated in-kernel (no ii/jj DMAs) -----------
        r = lax.broadcasted_iota(jnp.int32, (1, nhw), 1)
        if _is_pow2(W) and _is_pow2(H):        # powers of two -> shift / and
            w_bits = W.bit_length() - 1
            jj = r & (W - 1)
            ii = (r >> w_bits) & (H - 1)
        else:
            jj = r % W
            ii = (r // W) % H

        # ---- 8 boundary masks computed ONCE, reused by both tap builds -----
        mi = {-1: ii >= 1, 0: None, 1: ii < H - 1}
        mj = {-1: jj >= 1, 0: None, 1: jj < W - 1}
        masks = {}
        for di in (-1, 0, 1):
            for dj in (-1, 0, 1):
                if di == 0 and dj == 0:
                    masks[(di, dj)] = None
                elif di == 0:
                    masks[(di, dj)] = mj[dj]
                elif dj == 0:
                    masks[(di, dj)] = mi[di]
                else:
                    masks[(di, dj)] = mi[di] & mj[dj]

        def write_taps(a, slab_ref, cp):
            """Write the 9 shifted+masked taps of `a` (zero 'SAME' padding)
            into consecutive 8-row blocks of a VMEM slab.  Shifts are static
            lane rolls; masking is a select, not a float-mask multiply."""
            t = 0
            for di in (-1, 0, 1):
                for dj in (-1, 0, 1):
                    d = di * W + dj
                    s = a if d == 0 else jnp.roll(a, -d, axis=1)
                    m = masks[(di, dj)]
                    if m is not None:
                        s = jnp.where(m, s, 0.0)
                    slab_ref[t * cp:(t + 1) * cp, :] = s
                    t += 1

        def bn(acc, g, b):
            # one-pass batch statistics, f32 accumulation
            s = jnp.sum(acc, axis=1, keepdims=True)
            ss = jnp.sum(acc * acc, axis=1, keepdims=True)
            mean = s * inv_n
            var = jnp.maximum(ss * inv_n - mean * mean, 0.0)
            return (acc - mean) * lax.rsqrt(var + EPS) * g + b

        def silu(z):
            # exact SiLU: z*sigmoid(z) = 0.5*z*(1 + tanh(z/2)) -> one EUP push
            h = 0.5 * z
            return h + h * jnp.tanh(h)

        bnp = bnp_ref[...]                     # (cpo, 4) = [g1 | b1 | g2 | b2]
        g1, b1 = bnp[:, 0:1], bnp[:, 1:2]
        g2, b2 = bnp[:, 2:3], bnp[:, 3:4]

        # stage 1: Conv3x3 as ONE K = 9*cpi bf16 matmul, then BN + SiLU
        write_taps(x, tap1_ref, cpi)
        y1 = silu(bn(jnp.dot(w1_ref[...], tap1_ref[...].astype(jnp.bfloat16),
                             preferred_element_type=jnp.float32),
                     g1, b1))

        # stage 2 + 1x1 residual fused into ONE matmul:
        #   [[W2, 0], [0, Weq]] @ [taps(y1); x] -> top half = conv2, bottom = residual
        write_taps(y1, rhs2_ref, cpo)
        rhs2_ref[9 * cpo:9 * cpo + cpi, :] = x
        yr = jnp.dot(w2c_ref[...], rhs2_ref[...].astype(jnp.bfloat16),
                     preferred_element_type=jnp.float32)    # (2*cpo, NHW)
        y2 = bn(yr[:cpo, :], g2, b2)           # BN only on the conv branch
        o_ref[...] = silu(y2 + yr[cpo:, :])    # lane-dense unmasked store

    return kernel


# ---------------------------------------------------------------------------
# Wrapper (layout plumbing only — no FLOPs outside the kernel)
# ---------------------------------------------------------------------------
def res_block_forward(x_nchw, params):
    x = x_nchw.astype(jnp.float32)
    n, cin, h, w = x.shape
    cout = params["w1"].shape[-1]
    nhw = n * h * w
    assert nhw % 128 == 0, "lane-dense layout needs N*H*W % 128 == 0"
    cpi = _round_up(cin, 8)                    # sublane-align channel dims
    cpo = _round_up(cout, 8)

    # channels-major, lane-dense activation (Cp_in, N*H*W)
    xT = jnp.pad(x.transpose(1, 0, 2, 3).reshape(cin, nhw),
                 ((0, cpi - cin), (0, 0)))

    # pack HWIO 3x3 weights as (cp_out, 9*cp_in) matching the tap order
    def pack3x3(wh, ci, cp_in, co, cp_out):
        wp = jnp.zeros((9, cp_in, co), jnp.float32)
        wp = wp.at[:, :ci, :].set(wh.astype(jnp.float32).reshape(9, ci, co))
        wT = wp.reshape(9 * cp_in, co).T
        return jnp.pad(wT, ((0, cp_out - co), (0, 0)))

    w1T = pack3x3(params["w1"], cin, cpi, cout, cpo).astype(jnp.bfloat16)

    # block-diagonal fused stage-2 weight: [[W2, 0], [0, Weq]]  (2*cpo, 9*cpo+cpi)
    w2T = pack3x3(params["w2"], cout, cpo, cout, cpo)
    weqT = jnp.pad(params["w_eq"].astype(jnp.float32).T,
                   ((0, cpo - cout), (0, cpi - cin)))
    w2c = (jnp.zeros((2 * cpo, 9 * cpo + cpi), jnp.float32)
           .at[:cpo, :9 * cpo].set(w2T)
           .at[cpo:, 9 * cpo:].set(weqT)
           .astype(jnp.bfloat16))

    # packed BN params (cpo, 4), columns = [g1, b1, g2, b2]
    def col(v):
        return jnp.pad(v.astype(jnp.float32).reshape(cout, 1),
                       ((0, cpo - cout), (0, 0)))
    bnp = jnp.concatenate([col(params["g1"]), col(params["b1"]),
                           col(params["g2"]), col(params["b2"])], axis=1)

    cost = pl.CostEstimate(
        flops=2 * nhw * (cpo * 9 * cpi + 2 * cpo * (9 * cpo + cpi)) + 30 * cpo * nhw,
        transcendentals=2 * cpo * nhw,
        bytes_accessed=4 * cpi * nhw + 2 * w1T.size + 2 * w2c.size
                       + 4 * bnp.size + 4 * cpo * nhw,
    )

    vmem = pl.BlockSpec(memory_space=pltpu.MemorySpace.VMEM)
    oT = pl.pallas_call(
        _make_fused_kernel(h, w, cpi, cpo),
        out_shape=jax.ShapeDtypeStruct((cpo, nhw), jnp.float32),
        in_specs=[vmem] * 4,
        out_specs=vmem,
        scratch_shapes=[pltpu.VMEM((9 * cpi, nhw), jnp.float32),
                        pltpu.VMEM((9 * cpo + cpi, nhw), jnp.float32)],
        compiler_params=pltpu.CompilerParams(vmem_limit_bytes=32 * 1024 * 1024),
        cost_estimate=cost,
    )(xT, w1T, w2c, bnp)

    # (Cp_out, NHW) -> (N, Cout, H, W)
    return oT[:cout].reshape(cout, n, h, w).transpose(1, 0, 2, 3)


# ---------------------------------------------------------------------------
# Pure-JAX reference (for correctness check)
# ---------------------------------------------------------------------------
def res_block_reference(x_nchw, params):
    x = jnp.transpose(x_nchw, (0, 2, 3, 1)).astype(jnp.float32)
    dn = ("NHWC", "HWIO", "NHWC")

    def bn(y, g, b):
        mean = jnp.mean(y, axis=(0, 1, 2), keepdims=True)
        var = jnp.mean((y - mean) ** 2, axis=(0, 1, 2), keepdims=True)
        return (y - mean) * lax.rsqrt(var + EPS) * g + b

    def silu(y):
        return y * jax.nn.sigmoid(y)

    y = lax.conv_general_dilated(x, params["w1"], (1, 1), "SAME",
                                 dimension_numbers=dn)
    y = silu(bn(y, params["g1"], params["b1"]))
    y = lax.conv_general_dilated(y, params["w2"], (1, 1), "SAME",
                                 dimension_numbers=dn)
    y = bn(y, params["g2"], params["b2"])
    xr = jnp.einsum("nhwc,co->nhwo", x, params["w_eq"])
    y = silu(y + xr)
    return jnp.transpose(y, (0, 3, 1, 2))


# ---------------------------------------------------------------------------
if __name__ == "__main__":
    # Res_block(dim_in=4, dim_out=8, k=3, dr=1, down=1)
    N, CIN, COUT, H, W = 2, 4, 8, 16, 16

    key = jax.random.PRNGKey(0)
    k_x, k_w1, k_w2, k_eq, k_g1, k_b1, k_g2, k_b2 = jax.random.split(key, 8)

    x = jax.random.normal(k_x, (N, CIN, H, W), jnp.float32)   # NCHW like PyTorch
    params = {
        "w1": 0.2 * jax.random.normal(k_w1, (3, 3, CIN, COUT), jnp.float32),
        "w2": 0.2 * jax.random.normal(k_w2, (3, 3, COUT, COUT), jnp.float32),
        "w_eq": 0.2 * jax.random.normal(k_eq, (CIN, COUT), jnp.float32),
        "g1": 1.0 + 0.1 * jax.random.normal(k_g1, (COUT,), jnp.float32),
        "b1": 0.1 * jax.random.normal(k_b1, (COUT,), jnp.float32),
        "g2": 1.0 + 0.1 * jax.random.normal(k_g2, (COUT,), jnp.float32),
        "b2": 0.1 * jax.random.normal(k_b2, (COUT,), jnp.float32),
    }

    out = jax.block_until_ready(res_block_forward(x, params))
    ref = jax.block_until_ready(res_block_reference(x, params))

    assert out.shape == (N, COUT, H, W), out.shape
    # SiLU is now exact (tanh form); the tolerance covers only the bf16 MXU
    # operands of the two 3x3 convs + fused 1x1 (f32 accumulation throughout).
    assert jnp.allclose(out, ref, atol=2e-2, rtol=2e-2), \
        float(jnp.max(jnp.abs(out - ref)))
    print("KERNEL_OK")
</pallas_src>

<mosaic_0001>
module attributes {stable_mosaic.version = 11 : i64} {
  func.func @kernel(%arg0: memref<8x512xf32, #tpu.memory_space<vmem>>, %arg1: memref<8x72xbf16, #tpu.memory_space<vmem>>, %arg2: memref<16x80xbf16, #tpu.memory_space<vmem>>, %arg3: memref<8x4xf32, #tpu.memory_space<vmem>>, %arg4: memref<8x512xf32, #tpu.memory_space<vmem>>, %arg5: memref<72x512xf32, #tpu.memory_space<vmem>>, %arg6: memref<80x512xf32, #tpu.memory_space<vmem>>) attributes {dimension_semantics = [], scalar_prefetch = 0 : i64, scratch_operands = 2 : i64, tpu.core_type = #tpu.core_type<tc>} {
    %c0 = arith.constant 0 : index
    %c0_0 = arith.constant 0 : index
    %0 = vector.load %arg0[%c0, %c0_0] : memref<8x512xf32, #tpu.memory_space<vmem>>, vector<8x512xf32>
    %1 = tpu.iota {dimensions = array<i32: 1>} : vector<1x512xi32>
    %c15_i32 = arith.constant 15 : i32
    %2 = vector.broadcast %c15_i32 : i32 to vector<1x512xi32>
    %3 = arith.andi %1, %2 : vector<1x512xi32>
    %c4_i32 = arith.constant 4 : i32
    %4 = vector.broadcast %c4_i32 : i32 to vector<1x512xi32>
    %5 = arith.shrsi %1, %4 : vector<1x512xi32>
    %c15_i32_1 = arith.constant 15 : i32
    %6 = vector.broadcast %c15_i32_1 : i32 to vector<1x512xi32>
    %7 = arith.andi %5, %6 : vector<1x512xi32>
    %c1_i32 = arith.constant 1 : i32
    %8 = vector.broadcast %c1_i32 : i32 to vector<1x512xi32>
    %9 = arith.cmpi sge, %7, %8 : vector<1x512xi32>
    %c15_i32_2 = arith.constant 15 : i32
    %10 = vector.broadcast %c15_i32_2 : i32 to vector<1x512xi32>
    %11 = arith.cmpi slt, %7, %10 : vector<1x512xi32>
    %c1_i32_3 = arith.constant 1 : i32
    %12 = vector.broadcast %c1_i32_3 : i32 to vector<1x512xi32>
    %13 = arith.cmpi sge, %3, %12 : vector<1x512xi32>
    %c15_i32_4 = arith.constant 15 : i32
    %14 = vector.broadcast %c15_i32_4 : i32 to vector<1x512xi32>
    %15 = arith.cmpi slt, %3, %14 : vector<1x512xi32>
    %16 = arith.andi %9, %13 : vector<1x512xi1>
    %17 = arith.andi %9, %15 : vector<1x512xi1>
    %18 = arith.andi %11, %13 : vector<1x512xi1>
    %19 = arith.andi %11, %15 : vector<1x512xi1>
    %c0_5 = arith.constant 0 : index
    %c0_6 = arith.constant 0 : index
    %20 = vector.load %arg3[%c0_5, %c0_6] : memref<8x4xf32, #tpu.memory_space<vmem>>, vector<8x4xf32>
    %21 = vector.extract_strided_slice %20 {offsets = [0, 0], sizes = [8, 1], strides = [1, 1]} : vector<8x4xf32> to vector<8x1xf32>
    %22 = vector.extract_strided_slice %20 {offsets = [0, 1], sizes = [8, 1], strides = [1, 1]} : vector<8x4xf32> to vector<8x1xf32>
    %23 = vector.extract_strided_slice %20 {offsets = [0, 2], sizes = [8, 1], strides = [1, 1]} : vector<8x4xf32> to vector<8x1xf32>
    %24 = vector.extract_strided_slice %20 {offsets = [0, 3], sizes = [8, 1], strides = [1, 1]} : vector<8x4xf32> to vector<8x1xf32>
    %25 = vector.extract_strided_slice %0 {offsets = [0, 495], sizes = [8, 17], strides = [1, 1]} : vector<8x512xf32> to vector<8x17xf32>
    %26 = vector.extract_strided_slice %0 {offsets = [0, 0], sizes = [8, 495], strides = [1, 1]} : vector<8x512xf32> to vector<8x495xf32>
    %27 = tpu.concatenate %25, %26 in 1 : vector<8x17xf32>, vector<8x495xf32> -> vector<8x512xf32>
    %cst = arith.constant 0.000000e+00 : f32
    %28 = vector.shape_cast %16 : vector<1x512xi1> to vector<1x512xi1>
    %29 = vector.broadcast %28 : vector<1x512xi1> to vector<8x512xi1>
    %30 = vector.broadcast %cst : f32 to vector<8x512xf32>
    %31 = arith.select %29, %27, %30 : vector<8x512xi1>, vector<8x512xf32>
    %c0_7 = arith.constant 0 : index
    %c0_8 = arith.constant 0 : index
    %32 = vector.load %arg5[%c0_7, %c0_8] : memref<72x512xf32, #tpu.memory_space<vmem>>, vector<8x512xf32>
    tpu.vector_store %arg5[%c0_7, %c0_8], %31 {strides = array<i32>} : memref<72x512xf32, #tpu.memory_space<vmem>>, vector<8x512xf32>,
    %33 = vector.extract_strided_slice %0 {offsets = [0, 496], sizes = [8, 16], strides = [1, 1]} : vector<8x512xf32> to vector<8x16xf32>
    %34 = vector.extract_strided_slice %0 {offsets = [0, 0], sizes = [8, 496], strides = [1, 1]} : vector<8x512xf32> to vector<8x496xf32>
    %35 = tpu.concatenate %33, %34 in 1 : vector<8x16xf32>, vector<8x496xf32> -> vector<8x512xf32>
    %cst_9 = arith.constant 0.000000e+00 : f32
    %36 = vector.shape_cast %9 : vector<1x512xi1> to vector<1x512xi1>
    %37 = vector.broadcast %36 : vector<1x512xi1> to vector<8x512xi1>
    %38 = vector.broadcast %cst_9 : f32 to vector<8x512xf32>
    %39 = arith.select %37, %35, %38 : vector<8x512xi1>, vector<8x512xf32>
    %c8 = arith.constant 8 : index
    %c0_10 = arith.constant 0 : index
    %40 = vector.load %arg5[%c8, %c0_10] : memref<72x512xf32, #tpu.memory_space<vmem>>, vector<8x512xf32>
    tpu.vector_store %arg5[%c8, %c0_10], %39 {strides = array<i32>} : memref<72x512xf32, #tpu.memory_space<vmem>>, vector<8x512xf32>,
    %41 = vector.extract_strided_slice %0 {offsets = [0, 497], sizes = [8, 15], strides = [1, 1]} : vector<8x512xf32> to vector<8x15xf32>
    %42 = vector.extract_strided_slice %0 {offsets = [0, 0], sizes = [8, 497], strides = [1, 1]} : vector<8x512xf32> to vector<8x497xf32>
    %43 = tpu.concatenate %41, %42 in 1 : vector<8x15xf32>, vector<8x497xf32> -> vector<8x512xf32>
    %cst_11 = arith.constant 0.000000e+00 : f32
    %44 = vector.shape_cast %17 : vector<1x512xi1> to vector<1x512xi1>
    %45 = vector.broadcast %44 : vector<1x512xi1> to vector<8x512xi1>
    %46 = vector.broadcast %cst_11 : f32 to vector<8x512xf32>
    %47 = arith.select %45, %43, %46 : vector<8x512xi1>, vector<8x512xf32>
    %c16 = arith.constant 16 : index
    %c0_12 = arith.constant 0 : index
    %48 = vector.load %arg5[%c16, %c0_12] : memref<72x512xf32, #tpu.memory_space<vmem>>, vector<8x512xf32>
    tpu.vector_store %arg5[%c16, %c0_12], %47 {strides = array<i32>} : memref<72x512xf32, #tpu.memory_space<vmem>>, vector<8x512xf32>,
    %49 = vector.extract_strided_slice %0 {offsets = [0, 511], sizes = [8, 1], strides = [1, 1]} : vector<8x512xf32> to vector<8x1xf32>
    %50 = vector.extract_strided_slice %0 {offsets = [0, 0], sizes = [8, 511], strides = [1, 1]} : vector<8x512xf32> to vector<8x511xf32>
    %51 = tpu.concatenate %49, %50 in 1 : vector<8x1xf32>, vector<8x511xf32> -> vector<8x512xf32>
    %cst_13 = arith.constant 0.000000e+00 : f32
    %52 = vector.shape_cast %13 : vector<1x512xi1> to vector<1x512xi1>
    %53 = vector.broadcast %52 : vector<1x512xi1> to vector<8x512xi1>
    %54 = vector.broadcast %cst_13 : f32 to vector<8x512xf32>
    %55 = arith.select %53, %51, %54 : vector<8x512xi1>, vector<8x512xf32>
    %c24 = arith.constant 24 : index
    %c0_14 = arith.constant 0 : index
    %56 = vector.load %arg5[%c24, %c0_14] : memref<72x512xf32, #tpu.memory_space<vmem>>, vector<8x512xf32>
    tpu.vector_store %arg5[%c24, %c0_14], %55 {strides = array<i32>} : memref<72x512xf32, #tpu.memory_space<vmem>>, vector<8x512xf32>,
    %c32 = arith.constant 32 : index
    %c0_15 = arith.constant 0 : index
    %57 = vector.load %arg5[%c32, %c0_15] : memref<72x512xf32, #tpu.memory_space<vmem>>, vector<8x512xf32>
    tpu.vector_store %arg5[%c32, %c0_15], %0 {strides = array<i32>} : memref<72x512xf32, #tpu.memory_space<vmem>>, vector<8x512xf32>,
    %58 = vector.extract_strided_slice %0 {offsets = [0, 1], sizes = [8, 511], strides = [1, 1]} : vector<8x512xf32> to vector<8x511xf32>
    %59 = vector.extract_strided_slice %0 {offsets = [0, 0], sizes = [8, 1], strides = [1, 1]} : vector<8x512xf32> to vector<8x1xf32>
    %60 = tpu.concatenate %58, %59 in 1 : vector<8x511xf32>, vector<8x1xf32> -> vector<8x512xf32>
    %cst_16 = arith.constant 0.000000e+00 : f32
    %61 = vector.shape_cast %15 : vector<1x512xi1> to vector<1x512xi1>
    %62 = vector.broadcast %61 : vector<1x512xi1> to vector<8x512xi1>
    %63 = vector.broadcast %cst_16 : f32 to vector<8x512xf32>
    %64 = arith.select %62, %60, %63 : vector<8x512xi1>, vector<8x512xf32>
    %c40 = arith.constant 40 : index
    %c0_17 = arith.constant 0 : index
    %65 = vector.load %arg5[%c40, %c0_17] : memref<72x512xf32, #tpu.memory_space<vmem>>, vector<8x512xf32>
    tpu.vector_store %arg5[%c40, %c0_17], %64 {strides = array<i32>} : memref<72x512xf32, #tpu.memory_space<vmem>>, vector<8x512xf32>,
    %66 = vector.extract_strided_slice %0 {offsets = [0, 15], sizes = [8, 497], strides = [1, 1]} : vector<8x512xf32> to vector<8x497xf32>
    %67 = vector.extract_strided_slice %0 {offsets = [0, 0], sizes = [8, 15], strides = [1, 1]} : vector<8x512xf32> to vector<8x15xf32>
    %68 = tpu.concatenate %66, %67 in 1 : vector<8x497xf32>, vector<8x15xf32> -> vector<8x512xf32>
    %cst_18 = arith.constant 0.000000e+00 : f32
    %69 = vector.shape_cast %18 : vector<1x512xi1> to vector<1x512xi1>
    %70 = vector.broadcast %69 : vector<1x512xi1> to vector<8x512xi1>
    %71 = vector.broadcast %cst_18 : f32 to vector<8x512xf32>
    %72 = arith.select %70, %68, %71 : vector<8x512xi1>, vector<8x512xf32>
    %c48 = arith.constant 48 : index
    %c0_19 = arith.constant 0 : index
    %73 = vector.load %arg5[%c48, %c0_19] : memref<72x512xf32, #tpu.memory_space<vmem>>, vector<8x512xf32>
    tpu.vector_store %arg5[%c48, %c0_19], %72 {strides = array<i32>} : memref<72x512xf32, #tpu.memory_space<vmem>>, vector<8x512xf32>,
    %74 = vector.extract_strided_slice %0 {offsets = [0, 16], sizes = [8, 496], strides = [1, 1]} : vector<8x512xf32> to vector<8x496xf32>
    %75 = vector.extract_strided_slice %0 {offsets = [0, 0], sizes = [8, 16], strides = [1, 1]} : vector<8x512xf32> to vector<8x16xf32>
    %76 = tpu.concatenate %74, %75 in 1 : vector<8x496xf32>, vector<8x16xf32> -> vector<8x512xf32>
    %cst_20 = arith.constant 0.000000e+00 : f32
    %77 = vector.shape_cast %11 : vector<1x512xi1> to vector<1x512xi1>
    %78 = vector.broadcast %77 : vector<1x512xi1> to vector<8x512xi1>
    %79 = vector.broadcast %cst_20 : f32 to vector<8x512xf32>
    %80 = arith.select %78, %76, %79 : vector<8x512xi1>, vector<8x512xf32>
    %c56 = arith.constant 56 : index
    %c0_21 = arith.constant 0 : index
    %81 = vector.load %arg5[%c56, %c0_21] : memref<72x512xf32, #tpu.memory_space<vmem>>, vector<8x512xf32>
    tpu.vector_store %arg5[%c56, %c0_21], %80 {strides = array<i32>} : memref<72x512xf32, #tpu.memory_space<vmem>>, vector<8x512xf32>,
    %82 = vector.extract_strided_slice %0 {offsets = [0, 17], sizes = [8, 495], strides = [1, 1]} : vector<8x512xf32> to vector<8x495xf32>
    %83 = vector.extract_strided_slice %0 {offsets = [0, 0], sizes = [8, 17], strides = [1, 1]} : vector<8x512xf32> to vector<8x17xf32>
    %84 = tpu.concatenate %82, %83 in 1 : vector<8x495xf32>, vector<8x17xf32> -> vector<8x512xf32>
    %cst_22 = arith.constant 0.000000e+00 : f32
    %85 = vector.shape_cast %19 : vector<1x512xi1> to vector<1x512xi1>
    %86 = vector.broadcast %85 : vector<1x512xi1> to vector<8x512xi1>
    %87 = vector.broadcast %cst_22 : f32 to vector<8x512xf32>
    %88 = arith.select %86, %84, %87 : vector<8x512xi1>, vector<8x512xf32>
    %c64 = arith.constant 64 : index
    %c0_23 = arith.constant 0 : index
    %89 = vector.load %arg5[%c64, %c0_23] : memref<72x512xf32, #tpu.memory_space<vmem>>, vector<8x512xf32>
    tpu.vector_store %arg5[%c64, %c0_23], %88 {strides = array<i32>} : memref<72x512xf32, #tpu.memory_space<vmem>>, vector<8x512xf32>,
    %c0_24 = arith.constant 0 : index
    %c0_25 = arith.constant 0 : index
    %90 = vector.load %arg1[%c0_24, %c0_25] : memref<8x72xbf16, #tpu.memory_space<vmem>>, vector<8x72xbf16>
    %c0_26 = arith.constant 0 : index
    %c0_27 = arith.constant 0 : index
    %91 = vector.load %arg5[%c0_26, %c0_27] : memref<72x512xf32, #tpu.memory_space<vmem>>, vector<72x512xf32>
    %92 = arith.truncf %91 : vector<72x512xf32> to vector<72x512xbf16>
    %cst_28 = arith.constant dense<0.000000e+00> : vector<8x512xf32>
    %93 = tpu.matmul %90, %92, %cst_28 {dimension_numbers = #tpu.dot_dimension_numbers<[1], [0], [0], [1], [0, 0, 1, 1], [], []>} : vector<8x72xbf16>, vector<72x512xbf16>, vector<8x512xf32> -> vector<8x512xf32>
    %cst_29 = arith.constant dense<0.000000e+00> : vector<8xf32>
    %94 = vector.multi_reduction <add>, %93, %cst_29 [1] : vector<8x512xf32> to vector<8xf32>
    %95 = vector.shape_cast %94 : vector<8xf32> to vector<8x1xf32>
    %96 = arith.mulf %93, %93 : vector<8x512xf32>
    %cst_30 = arith.constant dense<0.000000e+00> : vector<8xf32>
    %97 = vector.multi_reduction <add>, %96, %cst_30 [1] : vector<8x512xf32> to vector<8xf32>
    %98 = vector.shape_cast %97 : vector<8xf32> to vector<8x1xf32>
    %cst_31 = arith.constant 0.001953125 : f32
    %99 = vector.broadcast %cst_31 : f32 to vector<8x1xf32>
    %100 = arith.mulf %95, %99 : vector<8x1xf32>
    %cst_32 = arith.constant 0.001953125 : f32
    %101 = vector.broadcast %cst_32 : f32 to vector<8x1xf32>
    %102 = arith.mulf %98, %101 : vector<8x1xf32>
    %103 = arith.mulf %100, %100 : vector<8x1xf32>
    %104 = arith.subf %102, %103 : vector<8x1xf32>
    %cst_33 = arith.constant 0.000000e+00 : f32
    %105 = vector.broadcast %cst_33 : f32 to vector<8x1xf32>
    %106 = arith.maximumf %104, %105 : vector<8x1xf32>
    %107 = vector.broadcast %100 : vector<8x1xf32> to vector<8x512xf32>
    %108 = arith.subf %93, %107 : vector<8x512xf32>
    %cst_34 = arith.constant 9.99999974E-6 : f32
    %109 = vector.broadcast %cst_34 : f32 to vector<8x1xf32>
    %110 = arith.addf %106, %109 : vector<8x1xf32>
    %111 = math.rsqrt %110 : vector<8x1xf32>
    %112 = vector.broadcast %111 : vector<8x1xf32> to vector<8x512xf32>
    %113 = arith.mulf %108, %112 : vector<8x512xf32>
    %114 = vector.broadcast %21 : vector<8x1xf32> to vector<8x512xf32>
    %115 = arith.mulf %113, %114 : vector<8x512xf32>
    %116 = vector.broadcast %22 : vector<8x1xf32> to vector<8x512xf32>
    %117 = arith.addf %115, %116 : vector<8x512xf32>
    %cst_35 = arith.constant 5.000000e-01 : f32
    %118 = vector.broadcast %cst_35 : f32 to vector<8x512xf32>
    %119 = arith.mulf %118, %117 : vector<8x512xf32>
    %120 = math.tanh %119 : vector<8x512xf32>
    %121 = arith.mulf %119, %120 : vector<8x512xf32>
    %122 = arith.addf %119, %121 : vector<8x512xf32>
    %123 = vector.extract_strided_slice %122 {offsets = [0, 495], sizes = [8, 17], strides = [1, 1]} : vector<8x512xf32> to vector<8x17xf32>
    %124 = vector.extract_strided_slice %122 {offsets = [0, 0], sizes = [8, 495], strides = [1, 1]} : vector<8x512xf32> to vector<8x495xf32>
    %125 = tpu.concatenate %123, %124 in 1 : vector<8x17xf32>, vector<8x495xf32> -> vector<8x512xf32>
    %cst_36 = arith.constant 0.000000e+00 : f32
    %126 = vector.shape_cast %16 : vector<1x512xi1> to vector<1x512xi1>
    %127 = vector.broadcast %126 : vector<1x512xi1> to vector<8x512xi1>
    %128 = vector.broadcast %cst_36 : f32 to vector<8x512xf32>
    %129 = arith.select %127, %125, %128 : vector<8x512xi1>, vector<8x512xf32>
    %c0_37 = arith.constant 0 : index
    %c0_38 = arith.constant 0 : index
    %130 = vector.load %arg6[%c0_37, %c0_38] : memref<80x512xf32, #tpu.memory_space<vmem>>, vector<8x512xf32>
    tpu.vector_store %arg6[%c0_37, %c0_38], %129 {strides = array<i32>} : memref<80x512xf32, #tpu.memory_space<vmem>>, vector<8x512xf32>,
    %131 = vector.extract_strided_slice %122 {offsets = [0, 496], sizes = [8, 16], strides = [1, 1]} : vector<8x512xf32> to vector<8x16xf32>
    %132 = vector.extract_strided_slice %122 {offsets = [0, 0], sizes = [8, 496], strides = [1, 1]} : vector<8x512xf32> to vector<8x496xf32>
    %133 = tpu.concatenate %131, %132 in 1 : vector<8x16xf32>, vector<8x496xf32> -> vector<8x512xf32>
    %cst_39 = arith.constant 0.000000e+00 : f32
    %134 = vector.shape_cast %9 : vector<1x512xi1> to vector<1x512xi1>
    %135 = vector.broadcast %134 : vector<1x512xi1> to vector<8x512xi1>
    %136 = vector.broadcast %cst_39 : f32 to vector<8x512xf32>
    %137 = arith.select %135, %133, %136 : vector<8x512xi1>, vector<8x512xf32>
    %c8_40 = arith.constant 8 : index
    %c0_41 = arith.constant 0 : index
    %138 = vector.load %arg6[%c8_40, %c0_41] : memref<80x512xf32, #tpu.memory_space<vmem>>, vector<8x512xf32>
    tpu.vector_store %arg6[%c8_40, %c0_41], %137 {strides = array<i32>} : memref<80x512xf32, #tpu.memory_space<vmem>>, vector<8x512xf32>,
    %139 = vector.extract_strided_slice %122 {offsets = [0, 497], sizes = [8, 15], strides = [1, 1]} : vector<8x512xf32> to vector<8x15xf32>
    %140 = vector.extract_strided_slice %122 {offsets = [0, 0], sizes = [8, 497], strides = [1, 1]} : vector<8x512xf32> to vector<8x497xf32>
    %141 = tpu.concatenate %139, %140 in 1 : vector<8x15xf32>, vector<8x497xf32> -> vector<8x512xf32>
    %cst_42 = arith.constant 0.000000e+00 : f32
    %142 = vector.shape_cast %17 : vector<1x512xi1> to vector<1x512xi1>
    %143 = vector.broadcast %142 : vector<1x512xi1> to vector<8x512xi1>
    %144 = vector.broadcast %cst_42 : f32 to vector<8x512xf32>
    %145 = arith.select %143, %141, %144 : vector<8x512xi1>, vector<8x512xf32>
    %c16_43 = arith.constant 16 : index
    %c0_44 = arith.constant 0 : index
    %146 = vector.load %arg6[%c16_43, %c0_44] : memref<80x512xf32, #tpu.memory_space<vmem>>, vector<8x512xf32>
    tpu.vector_store %arg6[%c16_43, %c0_44], %145 {strides = array<i32>} : memref<80x512xf32, #tpu.memory_space<vmem>>, vector<8x512xf32>,
    %147 = vector.extract_strided_slice %122 {offsets = [0, 511], sizes = [8, 1], strides = [1, 1]} : vector<8x512xf32> to vector<8x1xf32>
    %148 = vector.extract_strided_slice %122 {offsets = [0, 0], sizes = [8, 511], strides = [1, 1]} : vector<8x512xf32> to vector<8x511xf32>
    %149 = tpu.concatenate %147, %148 in 1 : vector<8x1xf32>, vector<8x511xf32> -> vector<8x512xf32>
    %cst_45 = arith.constant 0.000000e+00 : f32
    %150 = vector.shape_cast %13 : vector<1x512xi1> to vector<1x512xi1>
    %151 = vector.broadcast %150 : vector<1x512xi1> to vector<8x512xi1>
    %152 = vector.broadcast %cst_45 : f32 to vector<8x512xf32>
    %153 = arith.select %151, %149, %152 : vector<8x512xi1>, vector<8x512xf32>
    %c24_46 = arith.constant 24 : index
    %c0_47 = arith.constant 0 : index
    %154 = vector.load %arg6[%c24_46, %c0_47] : memref<80x512xf32, #tpu.memory_space<vmem>>, vector<8x512xf32>
    tpu.vector_store %arg6[%c24_46, %c0_47], %153 {strides = array<i32>} : memref<80x512xf32, #tpu.memory_space<vmem>>, vector<8x512xf32>,
    %c32_48 = arith.constant 32 : index
    %c0_49 = arith.constant 0 : index
    %155 = vector.load %arg6[%c32_48, %c0_49] : memref<80x512xf32, #tpu.memory_space<vmem>>, vector<8x512xf32>
    tpu.vector_store %arg6[%c32_48, %c0_49], %122 {strides = array<i32>} : memref<80x512xf32, #tpu.memory_space<vmem>>, vector<8x512xf32>,
    %156 = vector.extract_strided_slice %122 {offsets = [0, 1], sizes = [8, 511], strides = [1, 1]} : vector<8x512xf32> to vector<8x511xf32>
    %157 = vector.extract_strided_slice %122 {offsets = [0, 0], sizes = [8, 1], strides = [1, 1]} : vector<8x512xf32> to vector<8x1xf32>
    %158 = tpu.concatenate %156, %157 in 1 : vector<8x511xf32>, vector<8x1xf32> -> vector<8x512xf32>
    %cst_50 = arith.constant 0.000000e+00 : f32
    %159 = vector.shape_cast %15 : vector<1x512xi1> to vector<1x512xi1>
    %160 = vector.broadcast %159 : vector<1x512xi1> to vector<8x512xi1>
    %161 = vector.broadcast %cst_50 : f32 to vector<8x512xf32>
    %162 = arith.select %160, %158, %161 : vector<8x512xi1>, vector<8x512xf32>
    %c40_51 = arith.constant 40 : index
    %c0_52 = arith.constant 0 : index
    %163 = vector.load %arg6[%c40_51, %c0_52] : memref<80x512xf32, #tpu.memory_space<vmem>>, vector<8x512xf32>
    tpu.vector_store %arg6[%c40_51, %c0_52], %162 {strides = array<i32>} : memref<80x512xf32, #tpu.memory_space<vmem>>, vector<8x512xf32>,
    %164 = vector.extract_strided_slice %122 {offsets = [0, 15], sizes = [8, 497], strides = [1, 1]} : vector<8x512xf32> to vector<8x497xf32>
    %165 = vector.extract_strided_slice %122 {offsets = [0, 0], sizes = [8, 15], strides = [1, 1]} : vector<8x512xf32> to vector<8x15xf32>
    %166 = tpu.concatenate %164, %165 in 1 : vector<8x497xf32>, vector<8x15xf32> -> vector<8x512xf32>
    %cst_53 = arith.constant 0.000000e+00 : f32
    %167 = vector.shape_cast %18 : vector<1x512xi1> to vector<1x512xi1>
    %168 = vector.broadcast %167 : vector<1x512xi1> to vector<8x512xi1>
    %169 = vector.broadcast %cst_53 : f32 to vector<8x512xf32>
    %170 = arith.select %168, %166, %169 : vector<8x512xi1>, vector<8x512xf32>
    %c48_54 = arith.constant 48 : index
    %c0_55 = arith.constant 0 : index
    %171 = vector.load %arg6[%c48_54, %c0_55] : memref<80x512xf32, #tpu.memory_space<vmem>>, vector<8x512xf32>
    tpu.vector_store %arg6[%c48_54, %c0_55], %170 {strides = array<i32>} : memref<80x512xf32, #tpu.memory_space<vmem>>, vector<8x512xf32>,
    %172 = vector.extract_strided_slice %122 {offsets = [0, 16], sizes = [8, 496], strides = [1, 1]} : vector<8x512xf32> to vector<8x496xf32>
    %173 = vector.extract_strided_slice %122 {offsets = [0, 0], sizes = [8, 16], strides = [1, 1]} : vector<8x512xf32> to vector<8x16xf32>
    %174 = tpu.concatenate %172, %173 in 1 : vector<8x496xf32>, vector<8x16xf32> -> vector<8x512xf32>
    %cst_56 = arith.constant 0.000000e+00 : f32
    %175 = vector.shape_cast %11 : vector<1x512xi1> to vector<1x512xi1>
    %176 = vector.broadcast %175 : vector<1x512xi1> to vector<8x512xi1>
    %177 = vector.broadcast %cst_56 : f32 to vector<8x512xf32>
    %178 = arith.select %176, %174, %177 : vector<8x512xi1>, vector<8x512xf32>
    %c56_57 = arith.constant 56 : index
    %c0_58 = arith.constant 0 : index
    %179 = vector.load %arg6[%c56_57, %c0_58] : memref<80x512xf32, #tpu.memory_space<vmem>>, vector<8x512xf32>
    tpu.vector_store %arg6[%c56_57, %c0_58], %178 {strides = array<i32>} : memref<80x512xf32, #tpu.memory_space<vmem>>, vector<8x512xf32>,
    %180 = vector.extract_strided_slice %122 {offsets = [0, 17], sizes = [8, 495], strides = [1, 1]} : vector<8x512xf32> to vector<8x495xf32>
    %181 = vector.extract_strided_slice %122 {offsets = [0, 0], sizes = [8, 17], strides = [1, 1]} : vector<8x512xf32> to vector<8x17xf32>
    %182 = tpu.concatenate %180, %181 in 1 : vector<8x495xf32>, vector<8x17xf32> -> vector<8x512xf32>
    %cst_59 = arith.constant 0.000000e+00 : f32
    %183 = vector.shape_cast %19 : vector<1x512xi1> to vector<1x512xi1>
    %184 = vector.broadcast %183 : vector<1x512xi1> to vector<8x512xi1>
    %185 = vector.broadcast %cst_59 : f32 to vector<8x512xf32>
    %186 = arith.select %184, %182, %185 : vector<8x512xi1>, vector<8x512xf32>
    %c64_60 = arith.constant 64 : index
    %c0_61 = arith.constant 0 : index
    %187 = vector.load %arg6[%c64_60, %c0_61] : memref<80x512xf32, #tpu.memory_space<vmem>>, vector<8x512xf32>
    tpu.vector_store %arg6[%c64_60, %c0_61], %186 {strides = array<i32>} : memref<80x512xf32, #tpu.memory_space<vmem>>, vector<8x512xf32>,
    %c72 = arith.constant 72 : index
    %c0_62 = arith.constant 0 : index
    %188 = vector.load %arg6[%c72, %c0_62] : memref<80x512xf32, #tpu.memory_space<vmem>>, vector<8x512xf32>
    tpu.vector_store %arg6[%c72, %c0_62], %0 {strides = array<i32>} : memref<80x512xf32, #tpu.memory_space<vmem>>, vector<8x512xf32>,
    %c0_63 = arith.constant 0 : index
    %c0_64 = arith.constant 0 : index
    %189 = vector.load %arg2[%c0_63, %c0_64] : memref<16x80xbf16, #tpu.memory_space<vmem>>, vector<16x80xbf16>
    %c0_65 = arith.constant 0 : index
    %c0_66 = arith.constant 0 : index
    %190 = vector.load %arg6[%c0_65, %c0_66] : memref<80x512xf32, #tpu.memory_space<vmem>>, vector<80x512xf32>
    %191 = arith.truncf %190 : vector<80x512xf32> to vector<80x512xbf16>
    %cst_67 = arith.constant dense<0.000000e+00> : vector<16x512xf32>
    %192 = tpu.matmul %189, %191, %cst_67 {dimension_numbers = #tpu.dot_dimension_numbers<[1], [0], [0], [1], [0, 0, 1, 1], [], []>} : vector<16x80xbf16>, vector<80x512xbf16>, vector<16x512xf32> -> vector<16x512xf32>
    %193 = vector.extract_strided_slice %192 {offsets = [0, 0], sizes = [8, 512], strides = [1, 1]} : vector<16x512xf32> to vector<8x512xf32>
    %cst_68 = arith.constant dense<0.000000e+00> : vector<8xf32>
    %194 = vector.multi_reduction <add>, %193, %cst_68 [1] : vector<8x512xf32> to vector<8xf32>
    %195 = vector.shape_cast %194 : vector<8xf32> to vector<8x1xf32>
    %196 = arith.mulf %193, %193 : vector<8x512xf32>
    %cst_69 = arith.constant dense<0.000000e+00> : vector<8xf32>
    %197 = vector.multi_reduction <add>, %196, %cst_69 [1] : vector<8x512xf32> to vector<8xf32>
    %198 = vector.shape_cast %197 : vector<8xf32> to vector<8x1xf32>
    %cst_70 = arith.constant 0.001953125 : f32
    %199 = vector.broadcast %cst_70 : f32 to vector<8x1xf32>
    %200 = arith.mulf %195, %199 : vector<8x1xf32>
    %cst_71 = arith.constant 0.001953125 : f32
    %201 = vector.broadcast %cst_71 : f32 to vector<8x1xf32>
    %202 = arith.mulf %198, %201 : vector<8x1xf32>
    %203 = arith.mulf %200, %200 : vector<8x1xf32>
    %204 = arith.subf %202, %203 : vector<8x1xf32>
    %cst_72 = arith.constant 0.000000e+00 : f32
    %205 = vector.broadcast %cst_72 : f32 to vector<8x1xf32>
    %206 = arith.maximumf %204, %205 : vector<8x1xf32>
    %207 = vector.broadcast %200 : vector<8x1xf32> to vector<8x512xf32>
    %208 = arith.subf %193, %207 : vector<8x512xf32>
    %cst_73 = arith.constant 9.99999974E-6 : f32
    %209 = vector.broadcast %cst_73 : f32 to vector<8x1xf32>
    %210 = arith.addf %206, %209 : vector<8x1xf32>
    %211 = math.rsqrt %210 : vector<8x1xf32>
    %212 = vector.broadcast %211 : vector<8x1xf32> to vector<8x512xf32>
    %213 = arith.mulf %208, %212 : vector<8x512xf32>
    %214 = vector.broadcast %23 : vector<8x1xf32> to vector<8x512xf32>
    %215 = arith.mulf %213, %214 : vector<8x512xf32>
    %216 = vector.broadcast %24 : vector<8x1xf32> to vector<8x512xf32>
    %217 = arith.addf %215, %216 : vector<8x512xf32>
    %218 = vector.extract_strided_slice %192 {offsets = [8, 0], sizes = [8, 512], strides = [1, 1]} : vector<16x512xf32> to vector<8x512xf32>
    %219 = arith.addf %217, %218 : vector<8x512xf32>
    %cst_74 = arith.constant 5.000000e-01 : f32
    %220 = vector.broadcast %cst_74 : f32 to vector<8x512xf32>
    %221 = arith.mulf %220, %219 : vector<8x512xf32>
    %222 = math.tanh %221 : vector<8x512xf32>
    %223 = arith.mulf %221, %222 : vector<8x512xf32>
    %224 = arith.addf %221, %223 : vector<8x512xf32>
    %c0_75 = arith.constant 0 : index
    %c0_76 = arith.constant 0 : index
    %225 = vector.load %arg4[%c0_75, %c0_76] : memref<8x512xf32, #tpu.memory_space<vmem>>, vector<8x512xf32>
    tpu.vector_store %arg4[%c0_75, %c0_76], %224 {strides = array<i32>} : memref<8x512xf32, #tpu.memory_space<vmem>>, vector<8x512xf32>,
    return
  }
}

</mosaic_0001>

<bundles_post_ra>
// kernel: tpu_custom_call.1
= control target key start
LH: loop header
LB: loop body
LE: loop exit
PB: predicated region body
PF: predicated region fallthrough
CT: control target
= control target key end

     0   :  { %9 = vsyncpa [#allocation5], 0  ;;  %s2002_s0 = inlined_call_operand.hbm [shape: f32[8,512], index: 0, kind: input, shape index: {}]   ;;  %s2003_s1 = inlined_call_operand.vmem [shape: bf16[8,72], index: 1, kind: input, shape index: {}]   ;;  %s2004_s2 = inlined_call_operand.vmem [shape: bf16[16,80], index: 2, kind: input, shape index: {}]   ;;  %s2005_s3 = inlined_call_operand.vmem [shape: f32[8,4], index: 3, kind: input, shape index: {}]   ;;  %s2006_s4 = inlined_call_operand.hbm [shape: f32[8,512], index: 4, kind: output, shape index: {}]  }
   0x1   :  { %10 = vsyncpa [#allocation6], 0  ;;  %s1390_s15 = smov [#allocation4]   ;;  %s1342_s19 = scalar_lea.hbm %s2002_s0, 512 }
   0x2   :  { %s17_s16 = sshll.u32 %s1390_s15, 4  ;;  %p1343_p0 = scmp.ne.s32.totalorder %s2002_s0, %s1342_s19  ;;  %s18_s16 = int_to_ptr.vmem [resolvable:$true] %s17_s16 }
   0x3   :  { %p1346_p1 = scmp.lt.u32.totalorder %s1342_s19, %s2002_s0 }
   0x5   :  { %p1348_p2 = pnand %p1346_p1, %p1343_p0 }
   0x7   :  { %1351 = shalt.err (!%p1348_p2)
}
   0x8   :  { %s1352_s24 = scalar_lea.vmem %s18_s16, 512  ;;  %p1357_p4 = scmp.lt.s32.totalorder %s18_s16, %s18_s16 }
   0x9   :  { %p1353_p3 = scmp.ne.s32.totalorder %s18_s16, %s1352_s24  ;;  %p1358_p5 = scmp.lt.s32.totalorder %s1352_s24, %s1352_s24 }
   0xb   :  { %p1359_p6 = por %p1358_p5, %p1357_p4 }
   0xd   :  { %p1360_p7 = pnand %p1359_p6, %p1353_p3 }
   0xf   :  { %1363 = shalt.err (!%p1360_p7)
}
  0x10   :  { %20 = dma.hbm_to_vmem [thread:$0]  %s2002_s0, 512, %s18_s16, [#allocation5]  }
  0x11   :  { %1386 = dma.done.wait [#allocation5], 512  }
  0x12   :  { %1387 = vsyncadd [#allocation5], 4294966784  ;;  %v1442_v0 = vld [vmem:[#allocation4 + $0x10] sm:$0xff]  ;;  %v1444_v1 = vld [vmem:[#allocation4 + $0x18] sm:$0xff]  ;;  %s1391_s27 = smov 17   ;;  %s1392_s0 = smov 16   ;;  %v35_v9 = vlaneseq }
  0x13   :  { %v1446_v2 = vld [vmem:[#allocation4] sm:$0xff]  ;;  %v1176_v3 = vpack.i.bf16 %v1442_v0, %v1444_v1  ;;  %v1450_v4 = vld [vmem:[#allocation4 + $0x8] sm:$0xff]  ;;  %s1393_s28 = smov 1   ;;  %s1394_s29 = smov 15   ;;  %v1398_v8 = vmov 0   ;;  %v2048_v27 = vmov 0 }
  0x14   :  { %v1166_v5 = vpack.i.bf16 %v1450_v4, %v1446_v2  ;;  %v1211_v6 = vpack.i.bf16 %v1444_v1, %v1446_v2  ;;  %v1206_v7 = vpack.i.bf16 %v1442_v0, %v1450_v4  ;;  %s1395_s30 = smov 127   ;;  %s1396_s5 = smov 112   ;;  %471 = vmatprep.mubr.bf16.mxu0 %v1398_v8  ;;  %512 = vmatprep.mubr.bf16.mxu1 %v1398_v8  ;;  %v36_v10 = vand.u32 127, %v35_v9 }
  0x15   :  { %1177 = vrot.lane.b32.xlu1 %v1176_v3, %s1391_s27  ;;  %s1397_s6 = smov 113   ;;  %1241 = vset.pattern.permute.xlu0 %v1398_v8  ;;  %s1399_s7 = smov 111   ;;  %v2050_v29 = vmov 0  ;;  %v2054_v32 = vmov 0  ;;  %vm2012_vm12 = vcmask 138240   ;;  %vm2013_vm13 = vcmask 130048  }
  0x16   :  { %1167 = vrot.lane.b32.xlu0 %v1166_v5, %s1391_s27  ;;  %v37_v11 = vadd.s32 128, %v36_v10  ;;  %v39_v12 = vadd.s32 384, %v36_v10  ;;  %v1480_v14 = vadd.s32 256, %v36_v10  ;;  %v44_v16 = vshra.s32 %v36_v10, 4 }
  0x17   :  { %v40_v22 = vand.u32 15, %v36_v10  ;;  %v2058_v39 = vmov 0  ;;  %v2060_v40 = vmov 0  ;;  %v2062_v44 = vmov 0 }
  0x18   :  { %v45_v13 = vshra.s32 %v37_v11, 4  ;;  %v47_v15 = vshra.s32 %v39_v12, 4  ;;  %v41_v17 = vand.u32 15, %v37_v11  ;;  %v46_v19 = vshra.s32 %v1480_v14, 4 }
  0x19   :  { %1182 = vrot.lane.b32.xlu1 %v1176_v3, %s1392_s0  ;;  %v43_v20 = vand.u32 15, %v39_v12  ;;  %v1487_v23 = vand.u32 15, %v44_v16  ;;  %v42_v25 = vand.u32 15, %v1480_v14  ;;  %vm1503_vm5 = vcmp.ge.s32.totalorder %v40_v22, 1 }
  0x1a   :  { %1172 = vrot.lane.b32.xlu0 %v1166_v5, %s1392_s0  ;;  %v1482_v18 = vand.u32 15, %v45_v13  ;;  %v1485_v21 = vand.u32 15, %v47_v15  ;;  %vm1490_vm1 = vcmp.ge.s32.totalorder %v41_v17, 1  ;;  %v1495_v26 = vand.u32 15, %v46_v19 }
  0x1b   :  { %vm1498_vm3 = vcmp.ge.s32.totalorder %v43_v20, 1  ;;  %vm2007_vm4 = vcmp.ge.s32.totalorder %v1487_v23, 1  ;;  %v2051_v29 = vsel %vm1503_vm5, 4294967295, %v2050_v29  ;;  %vm1520_vm9 = vcmp.ge.s32.totalorder %v42_v25, 1 }
  0x1c   :  { %vm53_vm0 = vcmp.ge.s32.totalorder %v1482_v18, 1  ;;  %vm2008_vm2 = vcmp.ge.s32.totalorder %v1485_v21, 1  ;;  %v2049_v27 = vsel %vm1498_vm3, 4294967295, %v2048_v27  ;;  %vm2009_vm8 = vcmp.ge.s32.totalorder %v1495_v26, 1  ;;  %vm1528_vm10 = vmand %vm2007_vm4, %vm1503_vm5 }
  0x1d   :  { %1192 = vrot.lane.b32.xlu1 %v1166_v5, %s1393_s28  ;;  %vm69_vm6 = vmand %vm53_vm0, %vm1490_vm1  ;;  %v2055_v32 = vsel %vm1520_vm9, 4294967295, %v2054_v32  ;;  %vm1538_vm15 = vcmp.lt.s32.totalorder %v41_v17, 15  ;;  %v2064_v45 = vmov 0  ;;  %v2068_v50 = vmov 0 }
  0x1e   :  { %1187 = vrot.lane.b32.xlu0 %v1166_v5, %s1394_s29  ;;  %vm1515_vm7 = vmand %vm2008_vm2, %vm1498_vm3  ;;  %v2061_v40 = vsel %vm1538_vm15, 4294967295, %v2060_v40  ;;  %v2070_v55 = vmov 0  ;;  %v2073_v60 = vmov 0  ;;  %v2078_v12 = vmov 0 }
  0x1f   :  { %vm1534_vm14 = vmpackc.low %vm53_vm0, %vm69_vm6  ;;  %vm1550_vm6 = vcmp.lt.s32.totalorder %v40_v22, 15  ;;  %v2082_v14 = vmov 0  ;;  %v2086_v17 = vmov 0  ;;  %v2099_v49 = vmov 0 }
  0x20   :  { %v2059_v39 = vsel %vm1534_vm14, 4294967295, %v2058_v39  ;;  %vm1546_vm11 = vmpackc.low %vm2008_vm2, %vm1515_vm7  ;;  %v2065_v45 = vsel %vm1550_vm6, 4294967295, %v2064_v45  ;;  %vm1563_vm7 = vcmp.lt.s32.totalorder %v43_v20, 15 }
  0x21   :  { %1202 = vrot.lane.b32.xlu1 %v1176_v3, %s1393_s28  ;;  %v2063_v44 = vsel %vm1546_vm11, 4294967295, %v2062_v44  ;;  %vm1559_vm4 = vmand %vm2009_vm8, %vm1520_vm9  ;;  %v2069_v50 = vsel %vm1563_vm7, 4294967295, %v2068_v50  ;;  %vm2072_vm8 = vcmp.ge.s32.totalorder %v1487_v23, 1 }
  0x22   :  { %1197 = vrot.lane.b32.xlu0 %v1176_v3, %s1394_s29  ;;  %vm1575_vm2 = vmand %vm53_vm0, %vm1538_vm15  ;;  %vm2075_vm0 = vcmp.ge.s32.totalorder %v1495_v26, 1 }
  0x23   :  { %v2071_v55 = vsel %vm1575_vm2, 4294967295, %v2070_v55  ;;  %vm1585_vm9 = vmpackc.low %vm2072_vm8, %vm1528_vm10  ;;  %vm1604_vm10 = vcmp.lt.s32.totalorder %v42_v25, 15 }
  0x24   :  { %v2074_v60 = vsel %vm1585_vm9, 4294967295, %v2073_v60  ;;  %v2079_v12 = vsel %vm1604_vm10, 4294967295, %v2078_v12 }
  0x25   :  { %1212 = vrot.lane.b32.xlu1 %v1211_v6, %s1395_s30 }
  0x26   :  { %1207 = vrot.lane.b32.xlu0 %v1206_v7, %s1395_s30 }
  0x29   :  { %1222 = vrot.lane.b32.xlu1 %v1206_v7, %s1396_s5 }
  0x2a   :  { %1217 = vrot.lane.b32.xlu0 %v1206_v7, %s1397_s6  ;;  %v2076_v7 = vmov 0 }
  0x2d   :  { %1232 = vrot.lane.b32.xlu1 %v1211_v6, %s1396_s5 }
  0x2e   :  { %1227 = vrot.lane.b32.xlu0 %v1211_v6, %s1397_s6 }
  0x31   :  { %335 = vrot.lane.b32.xlu1 %v1442_v0, %s1399_s7 }
  0x32   :  { %1237 = vrot.lane.b32.xlu0 %v1166_v5, %s1399_s7 }
  0x36   :  { %337 = vrot.lane.b32.xlu0 %v1444_v1, %s1399_s7 }
  0x87   :  { %v1178_v28 = vpop.permute.xlu1 %1177 }
  0x88   :  { %v1168_v30 = vpop.permute.xlu0 %1167  ;;  %v1180_v33 = vunpack.i.h.bf16 %v1178_v28  ;;  %v1179_v34 = vunpack.i.l.bf16 %v1178_v28  ;;  %v2089_v28 = vmov 0 }
  0x89   :  { %v1170_v35 = vunpack.i.h.bf16 %v1168_v30  ;;  %v1169_v36 = vunpack.i.l.bf16 %v1168_v30 }
  0x8a   :  { %v101_v48 = vsel %vm2012_vm12, %v1180_v33, %v1179_v34 }
  0x8b   :  { %v1183_v38 = vpop.permute.xlu1 %1182  ;;  %v99_v51 = vsel %vm2012_vm12, %v1169_v36, %v1170_v35  ;;  %v106_v53 = vsel %vm2012_vm12, %v1179_v34, %v1169_v36  ;;  %v100_v54 = vsel %vm2012_vm12, %v1170_v35, %v1180_v33  ;;  %vm1594_vm12 = vmpackc.low %vm2075_vm0, %vm1559_vm4 }
  0x8c   :  { %v1185_v41 = vunpack.i.h.bf16 %v1183_v38  ;;  %v1184_v42 = vunpack.i.l.bf16 %v1183_v38  ;;  %v1173_v43 = vpop.permute.xlu0 %1172  ;;  %v2077_v7 = vsel %vm1594_vm12, 4294967295, %v2076_v7  ;;  %vm2081_vm4 = vmmov %vm2072_vm8 }
  0x8d   :  { %v1175_v46 = vunpack.i.h.bf16 %v1173_v43  ;;  %v1174_v47 = vunpack.i.l.bf16 %v1173_v43  ;;  %vm1615_vm0 = vmand %vm2081_vm4, %vm1550_vm6 }
  0x8e   :  { %v135_v52 = vsel %vm2013_vm13, %v1185_v41, %v1184_v42  ;;  %v2083_v14 = vsel %vm1615_vm0, 4294967295, %v2082_v14 }
  0x8f   :  { %v1193_v56 = vpop.permute.xlu1 %1192  ;;  %v133_v57 = vsel %vm2013_vm13, %v1174_v47, %v1175_v46  ;;  %v1068_v58 = vpack.c.bf16 %v135_v52, %v101_v48  ;;  %v140_v59 = vsel %vm2013_vm13, %v1184_v42, %v1174_v47  ;;  %v134_v61 = vsel %vm2013_vm13, %v1175_v46, %v1185_v41 }
  0x90   :  { %v1195_v62 = vunpack.i.h.bf16 %v1193_v56  ;;  %v1194_v63 = vunpack.i.l.bf16 %v1193_v56  ;;  %v1188_v3 = vpop.permute.xlu0 %1187  ;;  %v1044_v5 = vpack.c.bf16 %v133_v57, %v99_v51  ;;  %v1047_v6 = vpack.c.bf16 %v140_v59, %v106_v53 }
  0x91   :  { %v1190_v9 = vunpack.i.h.bf16 %v1188_v3  ;;  %v1189_v10 = vunpack.i.l.bf16 %v1188_v3  ;;  %1069 = vmatprep.subr.msk.bf16.mxu1 %vm1546_vm11, %v1068_v58  ;;  %v1071_v11 = vpack.c.bf16 %v134_v61, %v100_v54  ;;  %vm2080_vm13 = vcmask 7168  }
  0x92   :  { %v201_v13 = vsel %vm2080_vm13, %v1194_v63, %v1195_v62  ;;  %1045 = vmatprep.subr.msk.bf16.mxu0 %vm1534_vm14, %v1044_v5  ;;  %vm2084_vm11 = vcmask 121856   ;;  %vm2085_vm13 = vcmp.ge.s32.totalorder %v1485_v21, 1  ;;  %v2102_v54 = vmov 0 }
  0x93   :  { %v167_v15 = vsel %vm2084_vm11, %v1189_v10, %v1190_v9  ;;  %1048 = vmatpush1.bf16.msk.msra.mxu0 %vm1585_vm9, %v1047_v6  ;;  %1072 = vmatpush1.bf16.msk.msra.mxu1 %vm1594_vm12, %v1071_v11  ;;  %v1203_v16 = vpop.permute.xlu1 %1202  ;;  %vm1628_vm8 = vmand %vm2085_vm13, %vm1563_vm7  ;;  %vm2088_vm11 = vcmp.ge.s32.totalorder %v1495_v26, 1  ;;  %vm2091_vm12 = vcmask 7168   ;;  %vm2095_vm7 = vcmask 121856  }
  0x94   :  { %v2087_v17 = vsel %vm1628_vm8, 4294967295, %v2086_v17  ;;  %v1050_v19 = vpack.c.bf16 %v201_v13, %v167_v15  ;;  %v1205_v20 = vunpack.i.h.bf16 %v1203_v16  ;;  %v1204_v22 = vunpack.i.l.bf16 %v1203_v16  ;;  %v1198_v25 = vpop.permute.xlu0 %1197  ;;  %vm1636_vm4 = vmand %vm2088_vm11, %vm1604_vm10 }
  0x95   :  { %v2090_v28 = vsel %vm1636_vm4, 4294967295, %v2089_v28  ;;  %v1200_v30 = vunpack.i.h.bf16 %v1198_v25  ;;  %v1199_v31 = vunpack.i.l.bf16 %v1198_v25  ;;  %vm2092_vm9 = vmmov %vm2091_vm12  ;;  %vm2025_vm10 = vmmov 1  }
  0x96   :  { %v202_v33 = vsel %vm2091_vm12, %v1195_v62, %v1205_v20  ;;  %v203_v34 = vsel %vm2092_vm9, %v1205_v20, %v1204_v22  ;;  %vm2093_vm14 = vmmov %vm2092_vm9  ;;  %vm2098_vm9 = vnez %v2055_v32  ;;  %v2118_v11 = vmov 0 }
  0x97   :  { %v208_v35 = vsel %vm2093_vm14, %v1204_v22, %v1194_v63  ;;  %vm2094_vm11 = vmpackc.low %vm1490_vm1, %vm1575_vm2  ;;  %v168_v36 = vsel %vm2095_vm7, %v1190_v9, %v1200_v30  ;;  %v1213_v41 = vpop.permute.xlu1 %1212  ;;  %vm2113_vm2 = vmmov 1   ;;  %v2115_v63 = vmov 0  ;;  %v1321_v22 = vld [vmem:[%s2004_s2] sm:$0xff]   ;;  %s1404_s2 = smov [#allocation7]  }
  0x98   :  { %1051 = vmatprep.subr.msk.bf16.mxu0 %vm2094_vm11, %v1050_v19  ;;  %vm2032_vm6 = vmpackc.low %vm1498_vm3, %vm1628_vm8  ;;  %v1077_v46 = vpack.c.bf16 %v202_v33, %v168_v36  ;;  %v1215_v47 = vunpack.i.h.bf16 %v1213_v41  ;;  %v1208_v48 = vpop.permute.xlu0 %1207  ;;  %v1214_v51 = vunpack.i.l.bf16 %v1213_v41  ;;  %s1027_s12 = sshll.u32 %s1404_s2, 4  ;;  %s1028_s12 = int_to_ptr.vmem [resolvable:$true] %s1027_s12 }
  0x99   :  { %vm2096_vm13 = vmmov %vm2095_vm7  ;;  %v1210_v52 = vunpack.i.h.bf16 %v1208_v48  ;;  %v1209_v53 = vunpack.i.l.bf16 %v1208_v48  ;;  %s1364_s13 = scalar_lea.vmem %s1028_s12, 512  ;;  %p1369_p9 = scmp.lt.s32.totalorder %s1028_s12, %s1028_s12 }
  0x9a   :  { %v169_v37 = vsel %vm2096_vm13, %v1200_v30, %v1199_v31  ;;  %vm2097_vm12 = vmmov %vm2095_vm7  ;;  %vm2101_vm13 = vnez %v2069_v50  ;;  %p1365_p8 = scmp.ne.s32.totalorder %s1028_s12, %s1364_s13  ;;  %p1370_p10 = scmp.lt.s32.totalorder %s1364_s13, %s1364_s13 }
  0x9b   :  { %v174_v38 = vsel %vm2097_vm12, %v1199_v31, %v1189_v10  ;;  %v1074_v43 = vpack.c.bf16 %v203_v34, %v169_v37  ;;  %vm1667_vm7 = vmpackc.low %vm1538_vm15, %vm2025_vm10  ;;  %v1223_v62 = vpop.permute.xlu1 %1222  ;;  %vm2114_vm15 = vnez %v2065_v45  ;;  %v2157_v45 = vmov 0 }
  0x9c   :  { %v1053_v42 = vpack.c.bf16 %v208_v35, %v174_v38  ;;  %v2100_v49 = vsel %vm1667_vm7, 4294967295, %v2099_v49  ;;  %vm1674_vm12 = vmpackc.low %vm2101_vm13, %vm2025_vm10  ;;  %vm2105_vm10 = vcmp.lt.s32.totalorder %v1482_v18, 15  ;;  %v1218_v10 = vpop.permute.xlu0 %1217  ;;  %v1225_v13 = vunpack.i.h.bf16 %v1223_v62  ;;  %p1371_p11 = por %p1370_p10, %p1369_p9 }
  0x9d   :  { %v2103_v54 = vsel %vm1674_vm12, 4294967295, %v2102_v54  ;;  %vm2104_vm14 = vmpackc.low %vm1503_vm5, %vm1615_vm0  ;;  %1075 = vmatprep.subr.msk.bf16.mxu1 %vm2032_vm6, %v1074_v43  ;;  %vm2108_vm0 = vcmask 1039360   ;;  %v1224_v15 = vunpack.i.l.bf16 %v1223_v62  ;;  %v1220_v16 = vunpack.i.h.bf16 %v1218_v10 }
  0x9e   :  { %1054 = vmatpush1.bf16.msk.msra.mxu0 %vm2104_vm14, %v1053_v42  ;;  %vm1692_vm13 = vmand %vm2105_vm10, %vm1490_vm1  ;;  %v246_v57 = vsel %vm2108_vm0, %v1215_v47, %v1214_v51  ;;  %v1219_v19 = vunpack.i.l.bf16 %v1218_v10  ;;  %p1372_p12 = pnand %p1371_p11, %p1365_p8 }
  0x9f   :  { %vm2109_vm5 = vmmov %vm2108_vm0  ;;  %v1080_v3 = vpack.c.bf16 %v246_v57, %v1444_v1  ;;  %v1233_v31 = vpop.permute.xlu1 %1232 }
  0xa0   :  { %v240_v58 = vsel %vm2109_vm5, %v1210_v52, %v1215_v47  ;;  %vm2110_vm8 = vmmov %vm2108_vm0  ;;  %vm2117_vm5 = vnez %v2079_v12  ;;  %v1234_v33 = vunpack.i.l.bf16 %v1233_v31  ;;  %v1228_v34 = vpop.permute.xlu0 %1227 }
  0xa1   :  { %v238_v59 = vsel %vm2110_vm8, %v1214_v51, %v1209_v53  ;;  %vm2111_vm6 = vmmov %vm2108_vm0  ;;  %v1083_v5 = vpack.c.bf16 %v240_v58, %v1442_v0  ;;  %vm2120_vm8 = vcmp.lt.s32.totalorder %v1482_v18, 15  ;;  %v1230_v35 = vunpack.i.h.bf16 %v1228_v34 }
  0xa2   :  { %v239_v61 = vsel %vm2111_vm6, %v1209_v53, %v1210_v52  ;;  %vm2112_vm10 = vmpackc.low %vm2098_vm9, %vm1636_vm4  ;;  %v1059_v9 = vpack.c.bf16 %v238_v59, %v1446_v2  ;;  %vm2040_vm4 = vcmp.lt.s32.totalorder %v1495_v26, 15  ;;  %v1229_v36 = vunpack.i.l.bf16 %v1228_v34 }
  0xa3   :  { %1078 = vmatpush1.bf16.msk.msra.mxu1 %vm2112_vm10, %v1077_v46  ;;  %vm1710_vm11 = vmpackc.low %vm2114_vm15, %vm2113_vm2  ;;  %v1056_v6 = vpack.c.bf16 %v239_v61, %v1450_v4  ;;  %vm2123_vm10 = vnez %v2061_v40  ;;  %v1235_v40 = vunpack.i.h.bf16 %v1233_v31  ;;  %v336_v58 = vpop.permute.xlu1 %335  ;;  %v365_v31 = vld [vmem:[%s2003_s1] sm:$0xf]  ;;  %v1402_v59 = vmov 2  }
  0xa4   :  { %v2116_v63 = vsel %vm1710_vm11, 4294967295, %v2115_v63  ;;  %vm1721_vm6 = vmpackc.low %vm2117_vm5, %vm2113_vm2  ;;  %1081 = vmatprep.subr.msk.bf16.mxu1 %vm1674_vm12, %v1080_v3  ;;  %v1238_v57 = vpop.permute.xlu0 %1237  ;;  %v2150_v3 = vmov 0 }
  0xa5   :  { %v2119_v11 = vsel %vm1721_vm6, 4294967295, %v2118_v11  ;;  %vm1729_vm0 = vmpackc.low %vm2120_vm8, %vm1692_vm13  ;;  %1057 = vmatprep.subr.msk.bf16.mxu0 %vm1667_vm7, %v1056_v6  ;;  %vm2127_vm13 = vcmask 916480   ;;  %vm2129_vm7 = vnez %v2051_v29  ;;  %v1240_v61 = vunpack.i.h.bf16 %v1238_v57 }
  0xa6   :  { %vm2124_vm14 = vmmov %vm2120_vm8  ;;  %v307_v25 = vsel %vm2127_vm13, %v1224_v15, %v1225_v13  ;;  %vm2128_vm8 = vcmask 924672   ;;  %1060 = vmatpush1.bf16.msk.msra.mxu0 %vm1710_vm11, %v1059_v9  ;;  %vm2131_vm13 = vcmp.lt.s32.totalorder %v1485_v21, 15  ;;  %v1239_v62 = vunpack.i.l.bf16 %v1238_v57 }
  0xa7   :  { %vm1741_vm2 = vmand %vm2124_vm14, %vm2123_vm10  ;;  %v273_v30 = vsel %vm2128_vm8, %v1219_v19, %v1220_v16  ;;  %1084 = vmatpush1.bf16.msk.msra.mxu1 %vm1721_vm6, %v1083_v5  ;;  %vm2130_vm14 = vcmp.lt.s32.totalorder %v1487_v23, 15  ;;  %v2153_v5 = vmov 0 }
  0xa8   :  { %vm76_vm10 = vmand %vm2130_vm14, %vm2129_vm7  ;;  %v1062_v18 = vpack.c.bf16 %v307_v25, %v273_v30  ;;  %vm2134_vm14 = vcmask 916480   ;;  %vm2140_vm7 = vcmask 924672   ;;  %v338_v6 = vpop.permute.xlu0 %337 }
  0xa9   :  { %vm79_vm8 = vmand %vm2131_vm13, %vm1498_vm3  ;;  %v306_v38 = vsel %vm2134_vm14, %v1234_v33, %v1224_v15  ;;  %vm2137_vm13 = vcmp.lt.s32.totalorder %v1487_v23, 15  ;;  %v272_v46 = vsel %vm2140_vm7, %v1229_v36, %v1219_v19 }
  0xaa   :  { %vm1764_vm6 = vmand %vm2040_vm4, %vm2098_vm9  ;;  %1063 = vmatprep.subr.msk.bf16.mxu0 %vm1729_vm0, %v1062_v18  ;;  %v1065_v52 = vpack.c.bf16 %v306_v38, %v272_v46 }
  0xab   :  { %vm2135_vm11 = vmmov %vm2134_vm14  ;;  %vm2143_vm14 = vcmp.lt.s32.totalorder %v1485_v21, 15 }
  0xac   :  { %v308_v41 = vsel %vm2135_vm11, %v1225_v13, %v1235_v40  ;;  %vm2136_vm12 = vmmov %vm2135_vm11 }
  0xad   :  { %v314_v42 = vsel %vm2136_vm12, %v1235_v40, %v1234_v33  ;;  %vm1775_vm3 = vmpackc.low %vm2137_vm13, %vm76_vm10  ;;  %vm2042_vm12 = vcmask 908288   ;;  %v1401_v40 = vmov 1  }
  0xae   :  { %vm2141_vm4 = vmmov %vm2140_vm7  ;;  %vm2146_vm7 = vcmp.lt.s32.totalorder %v1495_v26, 15  ;;  %1066 = vmatpush1.bf16.msk.msra.mxu0 %vm1775_vm3, %v1065_v52  ;;  %v341_v23 = vsel %vm2042_vm12, %v1240_v61, %v336_v58  ;;  %v340_v12 = vsel %vm2042_vm12, %v1239_v62, %v1240_v61  ;;  %v342_v13 = vsel %vm2042_vm12, %v336_v58, %v338_v6  ;;  %1242 = vset.pattern.permute.xlu1 %v1401_v40 }
  0xaf   :  { %v274_v47 = vsel %vm2141_vm4, %v1220_v16, %v1230_v35  ;;  %vm2142_vm9 = vmmov %vm2141_vm4  ;;  %v358_v26 = vsel %vm1741_vm2, %v341_v23, 0.0 }
  0xb0   :  { %v280_v48 = vsel %vm2142_vm9, %v1230_v35, %v1229_v36  ;;  %vm1784_vm11 = vmpackc.low %vm2143_vm14, %vm79_vm8  ;;  %v1089_v56 = vpack.c.bf16 %v308_v41, %v274_v47  ;;  %v419_v10 = vpack.c.bf16 %v358_v26, %v358_v26 }
  0xb1   :  { %v1086_v53 = vpack.c.bf16 %v314_v42, %v280_v48  ;;  %vm1792_vm10 = vmpackc.low %vm2146_vm7, %vm1764_vm6 }
  0xb2   :  { %vm2149_vm4 = vmmov %vm2137_vm13 }
  0xb3   :  { %vm1800_vm9 = vmand %vm2149_vm4, %vm2114_vm15  ;;  %1087 = vmatprep.subr.msk.bf16.mxu1 %vm1784_vm11, %v1086_v53  ;;  %vm2155_vm15 = vnez %v2069_v50  ;;  %v348_v50 = vsel %vm2042_vm12, %v338_v6, %v1239_v62  ;;  %v1850_v62 = vld [vmem:[%s2005_s3] sm:$0xff]  ;;  %vm2159_vm4 = vcmask 138240  }
  0xb4   :  { %v2151_v3 = vsel %vm1800_vm9, 4294967295, %v2150_v3  ;;  %vm2152_vm6 = vmmov %vm2146_vm7  ;;  %1090 = vmatpush1.bf16.msk.msra.mxu1 %vm1792_vm10, %v1089_v56  ;;  %v357_v9 = vsel %vm1800_vm9, %v340_v12, 0.0  ;;  %vm422_vm7 = vcmask 588800   ;;  %vm2192_vm9 = vnez %v2090_v28 }
  0xb5   :  { %vm1812_vm8 = vmand %vm2152_vm6, %vm2117_vm5  ;;  %vm426_vm5 = vcmask 1043456   ;;  %v418_v21 = vpack.c.bf16 %v357_v9, %v357_v9  ;;  %vm2160_vm6 = vcmask 130048  }
  0xb6   :  { %v2154_v5 = vsel %vm1812_vm8, 4294967295, %v2153_v5  ;;  %vm2156_vm13 = vmmov %vm2143_vm14  ;;  %v359_v15 = vsel %vm1812_vm8, %v342_v13, 0.0  ;;  %1036 = vmatprep.subr.msk.bf16.mxu0 %vm426_vm5, %v419_v10 }
  0xb7   :  { %vm1823_vm14 = vmand %vm2156_vm13, %vm2155_vm15  ;;  %v420_v19 = vpack.c.bf16 %v359_v15, %v359_v15  ;;  %v428_v30 = vsel %vm426_vm5, %v418_v21, 0  ;;  %vm2161_vm15 = vnez %v2059_v39 }
  0xb8   :  { %v2158_v45 = vsel %vm1823_vm14, 4294967295, %v2157_v45  ;;  %v360_v16 = vsel %vm1823_vm14, %v348_v50, 0.0  ;;  %448 = vmatpush1.bf16.msra.mxu0 %v428_v30  ;;  %vm2162_vm13 = vmmov %vm2159_vm4 }
  0xb9   :  { %v421_v25 = vpack.c.bf16 %v360_v16, %v360_v16  ;;  %v434_v18 = vsel %vm426_vm5, %v420_v19, 0 }
  0xbb   :  { %1038 = vmatprep.subr.msk.bf16.mxu1 %vm426_vm5, %v421_v25  ;;  %1037 = vmatmul.mubr.msk.bf16.vlgmr.msra.gmra.mrb[0].mxu0 %vm422_vm7, %v365_v31  ;;  %vm2163_vm5 = vmmov %vm2159_vm4 }
  0xbc   :  { %489 = vmatpush1.bf16.msra.mxu1 %v434_v18  ;;  %898 = vmatprep.mubr.bf16.mxu0 %v1398_v8 }
  0xbf   :  { %1039 = vmatmul.mubr.msk.bf16.vlgmr.msra.gmra.mrb[0].mxu1 %vm422_vm7, %v365_v31  ;;  %vm2164_vm7 = vmmov %vm2160_vm6 }
  0xc0   :  { %941 = vmatprep.mubr.bf16.mxu1 %v1398_v8 }
 0x18e   :  { %v473_v33 = vpop.f32.mrb[0].mxu0 }
 0x18f   :  { %v526_v34 = vmul.f32 %v473_v33, %v473_v33  ;;  %v475_v35 = vpop.f32.mrb[1].mxu0 }
 0x190   :  { %v521_v36 = vadd.f32 %v475_v35, %v473_v33  ;;  %v527_v37 = vmul.f32 %v475_v35, %v475_v35  ;;  %v477_v38 = vpop.f32.mrb[2].mxu0 }
 0x191   :  { %v478_v46 = vpop.f32.mrb[3].mxu0 }
 0x192   :  { %v514_v41 = vpop.f32.mrb[0].mxu1  ;;  %v530_v53 = vadd.f32 %v527_v37, %v526_v34 }
 0x193   :  { %v528_v42 = vmul.f32 %v514_v41, %v514_v41  ;;  %v516_v47 = vpop.f32.mrb[1].mxu1  ;;  %v522_v52 = vadd.f32 %v521_v36, %v514_v41 }
 0x194   :  { %v518_v48 = vpop.f32.mrb[2].mxu1  ;;  %v529_v58 = vmul.f32 %v516_v47, %v516_v47 }
 0x195   :  { %v519_v56 = vpop.f32.mrb[3].mxu1  ;;  %v523_v57 = vadd.f32 %v522_v52, %v516_v47  ;;  %v531_v61 = vadd.f32 %v530_v53, %v528_v42 }
 0x197   :  { %524 = vadd.xlane.f32.xlu1 %v523_v57  ;;  %v532_v8 = vadd.f32 %v531_v61, %v529_v58 }
 0x199   :  { %533 = vadd.xlane.f32.xlu0 %v532_v8 }
 0x1a8   :  { %560 = vperm.xlu1 %1242, %v1850_v62  }
 0x1af   :  { %552 = vperm.xlu0 %1241, %v1850_v62  }
 0x1b3   :  { %1318 = vset.pattern.permute.xlu0 %v1402_v59 }
 0x224   :  { %v525_v23 = vpop.xlane.xlu1 %524 }
 0x225   :  { %v535_v12 = vmul.f32 0.001953125, %v525_v23 }
 0x226   :  { %v534_v26 = vpop.xlane.xlu0 %533 }
 0x227   :  { %v536_v6 = vmul.f32 0.001953125, %v534_v26  ;;  %v537_v9 = vmul.f32 %v535_v12, %v535_v12  ;;  %v540_v21 = vsub.f32 %v473_v33, %v535_v12  ;;  %v541_v15 = vsub.f32 %v475_v35, %v535_v12 }
 0x228   :  { %v542_v16 = vsub.f32 %v514_v41, %v535_v12  ;;  %v543_v19 = vsub.f32 %v516_v47, %v535_v12  ;;  %v561_v36 = vpop.permute.xlu1 %560 }
 0x229   :  { %v538_v10 = vsub.f32 %v536_v6, %v537_v9 }
 0x22b   :  { %v539_v13 = vmax.f32 %v538_v10, 0.0 }
 0x22d   :  { %v544_v50 = vadd.f32 1e-05, %v539_v13 }
 0x22e   :  { %v553_v30 = vpop.permute.xlu0 %552 }
 0x22f   :  { %1322 = vrsqrt.f32 %v544_v50 }
 0x239   :  { %v1323_v25 = vpop.eup %1322 }
 0x23a   :  { %v546_v31 = vmul.f32 %v1323_v25, %v540_v21  ;;  %v547_v18 = vmul.f32 %v1323_v25, %v541_v15  ;;  %v548_v40 = vmul.f32 %v1323_v25, %v542_v16  ;;  %v549_v34 = vmul.f32 %v1323_v25, %v543_v19 }
 0x23c   :  { %v555_v37 = vmul.f32 %v553_v30, %v546_v31  ;;  %v556_v38 = vmul.f32 %v553_v30, %v547_v18  ;;  %v557_v42 = vmul.f32 %v553_v30, %v548_v40  ;;  %v558_v46 = vmul.f32 %v553_v30, %v549_v34 }
 0x23e   :  { %v563_v48 = vadd.f32 %v561_v36, %v555_v37  ;;  %v564_v52 = vadd.f32 %v561_v36, %v556_v38  ;;  %v565_v53 = vadd.f32 %v561_v36, %v557_v42  ;;  %v566_v56 = vadd.f32 %v561_v36, %v558_v46 }
 0x240   :  { %v567_v57 = vmul.f32 0.5, %v563_v48  ;;  %v568_v33 = vmul.f32 0.5, %v564_v52  ;;  %v569_v35 = vmul.f32 0.5, %v565_v53  ;;  %v570_v41 = vmul.f32 0.5, %v566_v56 }
 0x242   :  { %1324 = vtanh.f32 %v567_v57 }
 0x243   :  { %1326 = vtanh.f32 %v568_v33 }
 0x244   :  { %1328 = vtanh.f32 %v569_v35 }
 0x245   :  { %1330 = vtanh.f32 %v570_v41 }
 0x24c   :  { %v1325_v47 = vpop.eup %1324 }
 0x24d   :  { %v1327_v58 = vpop.eup %1326  ;;  %v575_v61 = vmul.f32 %v1325_v47, %v567_v57 }
 0x24e   :  { %v1329_v8 = vpop.eup %1328  ;;  %v576_v23 = vmul.f32 %v1327_v58, %v568_v33 }
 0x24f   :  { %v1331_v12 = vpop.eup %1330  ;;  %v577_v26 = vmul.f32 %v1329_v8, %v569_v35  ;;  %v1854_v6 = vadd.f32 %v575_v61, %v567_v57 }
 0x250   :  { %v578_v9 = vmul.f32 %v1331_v12, %v570_v41  ;;  %v1856_v10 = vadd.f32 %v576_v23, %v568_v33 }
 0x251   :  { %v1858_v13 = vadd.f32 %v577_v26, %v569_v35 }
 0x252   :  { %v1860_v50 = vadd.f32 %v578_v9, %v570_v41  ;;  %v1243_v21 = vpack.i.bf16 %v1856_v10, %v1854_v6 }
 0x253   :  { %v1298_v19 = vpack.i.bf16 %v1858_v13, %v1856_v10 }
 0x254   :  { %v1278_v15 = vpack.i.bf16 %v1858_v13, %v1860_v50  ;;  %1244 = vrot.lane.b32.xlu1 %v1243_v21, %s1391_s27  ;;  %v1288_v16 = vpack.i.bf16 %v1860_v50, %v1854_v6 }
 0x256   :  { %1279 = vrot.lane.b32.xlu0 %v1278_v15, %s1393_s28 }
 0x258   :  { %1249 = vrot.lane.b32.xlu1 %v1243_v21, %s1392_s0 }
 0x25a   :  { %1289 = vrot.lane.b32.xlu0 %v1288_v16, %s1395_s30 }
 0x25c   :  { %1254 = vrot.lane.b32.xlu1 %v1278_v15, %s1391_s27 }
 0x25e   :  { %1299 = vrot.lane.b32.xlu0 %v1298_v19, %s1396_s5 }
 0x260   :  { %1259 = vrot.lane.b32.xlu1 %v1278_v15, %s1392_s0 }
 0x262   :  { %1309 = vrot.lane.b32.xlu0 %v1288_v16, %s1396_s5 }
 0x264   :  { %1264 = vrot.lane.b32.xlu1 %v1243_v21, %s1394_s29 }
 0x266   :  { %766 = vrot.lane.b32.xlu0 %v1854_v6, %s1399_s7 }
 0x268   :  { %1269 = vrot.lane.b32.xlu1 %v1243_v21, %s1393_s28 }
 0x26c   :  { %1274 = vrot.lane.b32.xlu1 %v1278_v15, %s1394_s29 }
 0x270   :  { %1284 = vrot.lane.b32.xlu1 %v1298_v19, %s1395_s30 }
 0x274   :  { %1294 = vrot.lane.b32.xlu1 %v1298_v19, %s1397_s6 }
 0x278   :  { %1304 = vrot.lane.b32.xlu1 %v1288_v16, %s1397_s6 }
 0x27c   :  { %1314 = vrot.lane.b32.xlu1 %v1298_v19, %s1399_s7 }
 0x280   :  { %772 = vrot.lane.b32.xlu1 %v1860_v50, %s1399_s7 }
 0x2c6   :  { %v1245_v25 = vpop.permute.xlu1 %1244 }
 0x2c7   :  { %v1247_v30 = vunpack.i.h.bf16 %v1245_v25  ;;  %v1246_v31 = vunpack.i.l.bf16 %v1245_v25 }
 0x2c8   :  { %v1280_v53 = vpop.permute.xlu0 %1279 }
 0x2c9   :  { %v596_v36 = vsel %vm2159_vm4, %v1246_v31, %v1247_v30  ;;  %vm2165_vm4 = vmmov %vm2160_vm6  ;;  %v1282_v25 = vunpack.i.h.bf16 %v1280_v53 }
 0x2ca   :  { %v1250_v18 = vpop.permute.xlu1 %1249  ;;  %vm2167_vm12 = vmmov %vm2165_vm4 }
 0x2cb   :  { %v1252_v40 = vunpack.i.h.bf16 %v1250_v18  ;;  %v1251_v34 = vunpack.i.l.bf16 %v1250_v18 }
 0x2cc   :  { %v1290_v26 = vpop.permute.xlu0 %1289 }
 0x2cd   :  { %v621_v37 = vsel %vm2160_vm6, %v1251_v34, %v1252_v40  ;;  %vm2166_vm6 = vmmov %vm2163_vm5  ;;  %v1291_v18 = vunpack.i.l.bf16 %v1290_v26 }
 0x2ce   :  { %v1092_v38 = vpack.c.bf16 %v621_v37, %v596_v36  ;;  %v1255_v42 = vpop.permute.xlu1 %1254 }
 0x2cf   :  { %v1257_v46 = vunpack.i.h.bf16 %v1255_v42  ;;  %v1256_v48 = vunpack.i.l.bf16 %v1255_v42 }
 0x2d0   :  { %1093 = vmatprep.subr.msk.bf16.mxu0 %vm2161_vm15, %v1092_v38  ;;  %vm2168_vm15 = vnez %v2063_v44  ;;  %v1300_v37 = vpop.permute.xlu0 %1299 }
 0x2d1   :  { %v597_v33 = vsel %vm2162_vm13, %v1247_v30, %v1257_v46  ;;  %v598_v35 = vsel %vm2163_vm5, %v1257_v46, %v1256_v48  ;;  %v603_v58 = vsel %vm2166_vm6, %v1256_v48, %v1246_v31  ;;  %vm2169_vm13 = vnez %v2074_v60 }
 0x2d2   :  { %v1260_v52 = vpop.permute.xlu1 %1259  ;;  %vm2170_vm5 = vnez %v2077_v7  ;;  %v1281_v30 = vunpack.i.l.bf16 %v1280_v53  ;;  %v1292_v31 = vunpack.i.h.bf16 %v1290_v26  ;;  %vm2174_vm6 = vcmask 1039360  }
 0x2d3   :  { %v1262_v56 = vunpack.i.h.bf16 %v1260_v52  ;;  %v1261_v57 = vunpack.i.l.bf16 %v1260_v52 }
 0x2d4   :  { %v707_v7 = vsel %vm2174_vm6, %v1292_v31, %v1291_v18 }
 0x2d5   :  { %v622_v41 = vsel %vm2164_vm7, %v1252_v40, %v1262_v56  ;;  %v623_v47 = vsel %vm2165_vm4, %v1262_v56, %v1261_v57  ;;  %v628_v61 = vsel %vm2167_vm12, %v1261_v57, %v1251_v34  ;;  %vm2171_vm12 = vcmask 121856  }
 0x2d6   :  { %v1122_v39 = vpack.c.bf16 %v623_v47, %v598_v35  ;;  %v1125_v8 = vpack.c.bf16 %v622_v41, %v597_v33  ;;  %v1265_v23 = vpop.permute.xlu1 %1264  ;;  %v1095_v12 = vpack.c.bf16 %v628_v61, %v603_v58  ;;  %vm2172_vm7 = vcmask 7168  }
 0x2d7   :  { %v1267_v9 = vunpack.i.h.bf16 %v1265_v23  ;;  %v1266_v21 = vunpack.i.l.bf16 %v1265_v23  ;;  %vm2173_vm4 = vmmov %vm2172_vm7  ;;  %v1134_v24 = vpack.c.bf16 %v707_v7, %v1860_v50  ;;  %v1302_v61 = vunpack.i.h.bf16 %v1300_v37 }
 0x2d8   :  { %1123 = vmatprep.subr.msk.bf16.mxu1 %vm2168_vm15, %v1122_v39  ;;  %1096 = vmatpush1.bf16.msk.msra.mxu0 %vm2169_vm13, %v1095_v12  ;;  %v673_v42 = vsel %vm2173_vm4, %v1282_v25, %v1281_v30  ;;  %vm2175_vm15 = vmmov %vm2173_vm4  ;;  %vm2176_vm13 = vnez %v2071_v55  ;;  %v1301_v55 = vunpack.i.l.bf16 %v1300_v37  ;;  %v1310_v39 = vpop.permute.xlu0 %1309 }
 0x2d9   :  { %1126 = vmatpush1.bf16.msk.msra.mxu1 %vm2170_vm5, %v1125_v8  ;;  %v646_v40 = vsel %vm2171_vm12, %v1266_v21, %v1267_v9  ;;  %vm2177_vm5 = vmpackc.low %vm1490_vm1, %vm2176_vm13  ;;  %vm2182_vm1 = vnez %v2051_v29  ;;  %vm2188_vm13 = vcmask 1039360  }
 0x2da   :  { %v1270_v15 = vpop.permute.xlu1 %1269  ;;  %vm2178_vm12 = vmmov %vm2173_vm4  ;;  %vm2183_vm4 = vnez %v2083_v14 }
 0x2db   :  { %v1272_v16 = vunpack.i.h.bf16 %v1270_v15  ;;  %v1271_v19 = vunpack.i.l.bf16 %v1270_v15  ;;  %vm2184_vm6 = vmpackc.low %vm2182_vm1, %vm2183_vm4  ;;  %vm2194_vm4 = vnez %v2103_v54 }
 0x2dd   :  { %v671_v44 = vsel %vm2172_vm7, %v1271_v19, %v1272_v16  ;;  %v672_v46 = vsel %vm2175_vm15, %v1272_v16, %v1282_v25  ;;  %v678_v48 = vsel %vm2178_vm12, %v1281_v30, %v1271_v19  ;;  %vm2179_vm7 = vcmask 121856  }
 0x2de   :  { %v1098_v34 = vpack.c.bf16 %v671_v44, %v646_v40  ;;  %v1275_v36 = vpop.permute.xlu1 %1274  ;;  %vm2180_vm8 = vmmov %vm2179_vm7  ;;  %vm2185_vm15 = vnez %v2049_v27 }
 0x2df   :  { %v1277_v38 = vunpack.i.h.bf16 %v1275_v36  ;;  %v1276_v60 = vunpack.i.l.bf16 %v1275_v36  ;;  %vm2181_vm14 = vmmov %vm2179_vm7 }
 0x2e0   :  { %1099 = vmatprep.subr.msk.bf16.mxu0 %vm2177_vm5, %v1098_v34  ;;  %vm2189_vm5 = vmmov %vm2188_vm13  ;;  %v767_v34 = vpop.permute.xlu0 %766 }
 0x2e1   :  { %v647_v52 = vsel %vm2179_vm7, %v1267_v9, %v1277_v38  ;;  %v648_v53 = vsel %vm2180_vm8, %v1277_v38, %v1276_v60  ;;  %v653_v56 = vsel %vm2181_vm14, %v1276_v60, %v1266_v21  ;;  %vm2186_vm8 = vnez %v2087_v17  ;;  %vm2190_vm12 = vmmov %vm2189_vm5 }
 0x2e2   :  { %v1101_v57 = vpack.c.bf16 %v678_v48, %v653_v56  ;;  %v1128_v33 = vpack.c.bf16 %v673_v42, %v648_v53  ;;  %v1131_v35 = vpack.c.bf16 %v672_v46, %v647_v52  ;;  %v1285_v41 = vpop.permute.xlu1 %1284  ;;  %vm2187_vm14 = vmpackc.low %vm2185_vm15, %vm2186_vm8  ;;  %vm2191_vm7 = vnez %v2055_v32 }
 0x2e3   :  { %v1287_v47 = vunpack.i.h.bf16 %v1285_v41  ;;  %v1286_v58 = vunpack.i.l.bf16 %v1285_v41  ;;  %vm2193_vm1 = vmpackc.low %vm2191_vm7, %vm2192_vm9  ;;  %v1312_v9 = vunpack.i.h.bf16 %v1310_v39  ;;  %v1311_v21 = vunpack.i.l.bf16 %v1310_v39 }
 0x2e4   :  { %1102 = vmatpush1.bf16.msk.msra.mxu0 %vm2184_vm6, %v1101_v57  ;;  %1129 = vmatprep.subr.msk.bf16.mxu1 %vm2187_vm14, %v1128_v33  ;;  %vm2195_vm6 = vnez %v2100_v49  ;;  %vm2196_vm15 = vcmask 916480   ;;  %vm2197_vm9 = vcmask 924672   ;;  %vm2198_vm8 = vnez %v2116_v63 }
 0x2e5   :  { %v701_v8 = vsel %vm2188_vm13, %v1287_v47, %v1292_v31  ;;  %v699_v23 = vsel %vm2189_vm5, %v1291_v18, %v1286_v58  ;;  %v700_v50 = vsel %vm2190_vm12, %v1286_v58, %v1287_v47  ;;  %1132 = vmatpush1.bf16.msk.msra.mxu1 %vm2193_vm1, %v1131_v35  ;;  %v750_v32 = vsel %vm2196_vm15, %v1301_v55, %v1302_v61  ;;  %vm2200_vm13 = vmmov %vm2196_vm15 }
 0x2e6   :  { %v1137_v27 = vpack.c.bf16 %v701_v8, %v1858_v13  ;;  %v1104_v29 = vpack.c.bf16 %v700_v50, %v1856_v10  ;;  %v1107_v14 = vpack.c.bf16 %v699_v23, %v1854_v6  ;;  %v1295_v17 = vpop.permute.xlu1 %1294  ;;  %1135 = vmatprep.subr.msk.bf16.mxu1 %vm2194_vm4, %v1134_v24  ;;  %vm2199_vm14 = vnez %v2119_v11  ;;  %vm2201_vm5 = vmmov %vm2200_vm13 }
 0x2e7   :  { %v1297_v12 = vunpack.i.h.bf16 %v1295_v17  ;;  %v1296_v26 = vunpack.i.l.bf16 %v1295_v17  ;;  %v749_v15 = vsel %vm2200_vm13, %v1311_v21, %v1301_v55  ;;  %v751_v16 = vsel %vm2201_vm5, %v1302_v61, %v1312_v9  ;;  %vm2202_vm12 = vmmov %vm2201_vm5 }
 0x2e8   :  { %1105 = vmatprep.subr.msk.bf16.mxu0 %vm2195_vm6, %v1104_v29  ;;  %v757_v49 = vsel %vm2202_vm12, %v1312_v9, %v1311_v21  ;;  %vm2203_vm7 = vmmov %vm2197_vm9  ;;  %vm2208_vm15 = vmmov 1   ;;  %vm2212_vm13 = vnez %v2158_v45  ;;  %vm2213_vm5 = vnez %v2154_v5 }
 0x2e9   :  { %v725_v28 = vsel %vm2197_vm9, %v1296_v26, %v1297_v12  ;;  %1108 = vmatpush1.bf16.msk.msra.mxu0 %vm2198_vm8, %v1107_v14  ;;  %1138 = vmatpush1.bf16.msk.msra.mxu1 %vm2199_vm14, %v1137_v27  ;;  %vm2204_vm1 = vmmov %vm2203_vm7  ;;  %vm862_vm12 = vcmask 654336  }
 0x2ea   :  { %v1110_v6 = vpack.c.bf16 %v750_v32, %v725_v28  ;;  %v1305_v54 = vpop.permute.xlu1 %1304  ;;  %vm2205_vm4 = vmmov %vm2204_vm1 }
 0x2eb   :  { %v1307_v10 = vunpack.i.h.bf16 %v1305_v54  ;;  %v1306_v13 = vunpack.i.l.bf16 %v1305_v54  ;;  %vm1115_vm9 = vmpackc.low %vm2208_vm15, %vm1741_vm2 }
 0x2ec   :  { %1111 = vmatprep.subr.msk.bf16.mxu0 %vm1729_vm0, %v1110_v6  ;;  %vm2206_vm0 = vcmask 908288   ;;  %vm1148_vm2 = vmpackc.low %vm2208_vm15, %vm2213_vm5 }
 0x2ed   :  { %v724_v19 = vsel %vm2203_vm7, %v1306_v13, %v1296_v26  ;;  %v726_v63 = vsel %vm2204_vm1, %v1297_v12, %v1307_v10  ;;  %v732_v11 = vsel %vm2205_vm4, %v1307_v10, %v1306_v13  ;;  %vm2207_vm6 = vmmov %vm2206_vm0 }
 0x2ee   :  { %v1113_v25 = vpack.c.bf16 %v749_v15, %v724_v19  ;;  %v1140_v30 = vpack.c.bf16 %v757_v49, %v732_v11  ;;  %v1143_v31 = vpack.c.bf16 %v751_v16, %v726_v63  ;;  %v1315_v18 = vpop.permute.xlu1 %1314  ;;  %vm2210_vm8 = vmmov %vm2206_vm0 }
 0x2ef   :  { %v1317_v40 = vunpack.i.h.bf16 %v1315_v18  ;;  %v1316_v44 = vunpack.i.l.bf16 %v1315_v18  ;;  %vm2211_vm14 = vmmov %vm2206_vm0 }
 0x2f0   :  { %1114 = vmatpush1.bf16.msk.msra.mxu0 %vm1775_vm3, %v1113_v25  ;;  %1141 = vmatprep.subr.msk.bf16.mxu1 %vm1784_vm11, %v1140_v30  ;;  %vm2209_vm3 = vnez %v2151_v3  ;;  %v1403_v3 = vmov 3  }
 0x2f1   :  { %v774_v20 = vsel %vm2206_vm0, %v767_v34, %v1316_v44  ;;  %v775_v36 = vsel %vm2207_vm6, %v1316_v44, %v1317_v40  ;;  %1144 = vmatpush1.bf16.msk.msra.mxu1 %vm1792_vm10, %v1143_v31  ;;  %vm1118_vm11 = vmpackc.low %vm2208_vm15, %vm2209_vm3  ;;  %1319 = vset.pattern.permute.xlu1 %v1403_v3 }
 0x2f2   :  { %v1116_v37 = vpack.c.bf16 %v1450_v4, %v775_v36  ;;  %v1119_v38 = vpack.c.bf16 %v1446_v2, %v774_v20  ;;  %v773_v43 = vpop.permute.xlu1 %772  ;;  %vm1145_vm10 = vmpackc.low %vm2208_vm15, %vm2212_vm13 }
 0x2f3   :  { %v776_v51 = vsel %vm2210_vm8, %v1317_v40, %v773_v43  ;;  %v782_v60 = vsel %vm2211_vm14, %v773_v43, %v767_v34 }
 0x2f4   :  { %v1146_v4 = vpack.c.bf16 %v1444_v1, %v782_v60  ;;  %v1149_v2 = vpack.c.bf16 %v1442_v0, %v776_v51  ;;  %1117 = vmatprep.subr.msk.bf16.mxu0 %vm1115_vm9, %v1116_v37 }
 0x2f5   :  { %1120 = vmatpush1.bf16.msk.msra.mxu0 %vm1118_vm11, %v1119_v38 }
 0x2f6   :  { %1147 = vmatprep.subr.msk.bf16.mxu1 %vm1145_vm10, %v1146_v4 }
 0x2f7   :  { %1150 = vmatpush1.bf16.msk.msra.mxu1 %vm1148_vm2, %v1149_v2 }
 0x2f8   :  { %1041 = vmatmul.mubr.msk.bf16.vlgmr.msra.gmra.mrb[4].mxu0 %vm862_vm12, %v1321_v22 }
 0x2fa   :  { %1042 = vmatmul.mubr.msk.bf16.vlgmr.msra.gmra.mrb[4].mxu1 %vm862_vm12, %v1321_v22 }
 0x3cb   :  { %v900_v5 = vpop.f32.mrb[4].mxu0 }
 0x3cc   :  { %v957_v45 = vmul.f32 %v900_v5, %v900_v5  ;;  %v902_v1 = vpop.f32.mrb[5].mxu0 }
 0x3cd   :  { %v952_v42 = vadd.f32 %v902_v1, %v900_v5  ;;  %v958_v0 = vmul.f32 %v902_v1, %v902_v1  ;;  %v904_v7 = vpop.f32.mrb[6].mxu0  ;;  %v943_v46 = vpop.f32.mrb[4].mxu1 }
 0x3ce   :  { %v959_v48 = vmul.f32 %v943_v46, %v943_v46  ;;  %v906_v52 = vpop.f32.mrb[7].mxu0  ;;  %v945_v53 = vpop.f32.mrb[5].mxu1 }
 0x3cf   :  { %v947_v56 = vpop.f32.mrb[6].mxu1  ;;  %v953_v57 = vadd.f32 %v952_v42, %v943_v46  ;;  %v961_v33 = vadd.f32 %v958_v0, %v957_v45  ;;  %v960_v47 = vmul.f32 %v945_v53, %v945_v53 }
 0x3d0   :  { %v949_v35 = vpop.f32.mrb[7].mxu1 }
 0x3d1   :  { %v954_v41 = vadd.f32 %v953_v57, %v945_v53  ;;  %v962_v58 = vadd.f32 %v961_v33, %v959_v48 }
 0x3d3   :  { %955 = vadd.xlane.f32.xlu0 %v954_v41  ;;  %v963_v24 = vadd.f32 %v962_v58, %v960_v47 }
 0x3d5   :  { %964 = vadd.xlane.f32.xlu1 %v963_v24 }
 0x3e6   :  { %990 = vperm.xlu1 %1319, %v1850_v62  }
 0x3e9   :  { %982 = vperm.xlu0 %1318, %v1850_v62  }
 0x3ed   :  { %1320 = vset.pattern.permute.xlu0 %v1403_v3 }
 0x460   :  { %v956_v61 = vpop.xlane.xlu0 %955 }
 0x461   :  { %v966_v55 = vmul.f32 0.001953125, %v956_v61 }
 0x462   :  { %v965_v39 = vpop.xlane.xlu1 %964 }
 0x463   :  { %v967_v8 = vmul.f32 0.001953125, %v965_v39  ;;  %v968_v23 = vmul.f32 %v966_v55, %v966_v55  ;;  %v971_v14 = vsub.f32 %v900_v5, %v966_v55  ;;  %v972_v17 = vsub.f32 %v902_v1, %v966_v55 }
 0x464   :  { %v973_v12 = vsub.f32 %v943_v46, %v966_v55  ;;  %v974_v26 = vsub.f32 %v945_v53, %v966_v55 }
 0x465   :  { %v969_v50 = vsub.f32 %v967_v8, %v968_v23 }
 0x466   :  { %v991_v54 = vpop.permute.xlu1 %990 }
 0x467   :  { %v970_v27 = vmax.f32 %v969_v50, 0.0 }
 0x468   :  { %v983_v21 = vpop.permute.xlu0 %982 }
 0x469   :  { %v975_v29 = vadd.f32 1e-05, %v970_v27 }
 0x46b   :  { %1332 = vrsqrt.f32 %v975_v29 }
 0x475   :  { %v1333_v9 = vpop.eup %1332 }
 0x476   :  { %v977_v32 = vmul.f32 %v1333_v9, %v971_v14  ;;  %v978_v28 = vmul.f32 %v1333_v9, %v972_v17  ;;  %v979_v6 = vmul.f32 %v1333_v9, %v973_v12  ;;  %v980_v62 = vmul.f32 %v1333_v9, %v974_v26 }
 0x478   :  { %v985_v10 = vmul.f32 %v983_v21, %v977_v32  ;;  %v986_v13 = vmul.f32 %v983_v21, %v978_v28  ;;  %v987_v15 = vmul.f32 %v983_v21, %v979_v6  ;;  %v988_v16 = vmul.f32 %v983_v21, %v980_v62 }
 0x47a   :  { %v993_v49 = vadd.f32 %v991_v54, %v985_v10  ;;  %v994_v19 = vadd.f32 %v991_v54, %v986_v13  ;;  %v995_v63 = vadd.f32 %v991_v54, %v987_v15  ;;  %v996_v11 = vadd.f32 %v991_v54, %v988_v16 }
 0x47c   :  { %v997_v25 = vadd.f32 %v993_v49, %v904_v7  ;;  %v998_v30 = vadd.f32 %v994_v19, %v906_v52  ;;  %v999_v31 = vadd.f32 %v995_v63, %v947_v56  ;;  %v1000_v18 = vadd.f32 %v996_v11, %v949_v35 }
 0x47e   :  { %v1001_v40 = vmul.f32 0.5, %v997_v25  ;;  %v1002_v44 = vmul.f32 0.5, %v998_v30  ;;  %v1003_v34 = vmul.f32 0.5, %v999_v31  ;;  %v1004_v20 = vmul.f32 0.5, %v1000_v18 }
 0x480   :  { %1334 = vtanh.f32 %v1001_v40 }
 0x481   :  { %1336 = vtanh.f32 %v1002_v44 }
 0x482   :  { %1338 = vtanh.f32 %v1003_v34 }
 0x483   :  { %1340 = vtanh.f32 %v1004_v20 }
 0x48a   :  { %v1335_v36 = vpop.eup %1334 }
 0x48b   :  { %v1337_v37 = vpop.eup %1336  ;;  %v1009_v38 = vmul.f32 %v1335_v36, %v1001_v40 }
 0x48c   :  { %v1339_v43 = vpop.eup %1338  ;;  %v1010_v51 = vmul.f32 %v1337_v37, %v1002_v44 }
 0x48d   :  { %v1341_v60 = vpop.eup %1340  ;;  %v1011_v4 = vmul.f32 %v1339_v43, %v1003_v34  ;;  %v1013_v2 = vadd.f32 %v1009_v38, %v1001_v40 }
 0x48e   :  { %v1012_v22 = vmul.f32 %v1341_v60, %v1004_v20  ;;  %v1014_v59 = vadd.f32 %v1010_v51, %v1002_v44 }
 0x48f   :  { %v1015_v3 = vadd.f32 %v1011_v4, %v1003_v34  ;;  %1017 = vst [vmem:[#allocation7] sm:$0xff] %v1013_v2 }
 0x490   :  { %v1016_v5 = vadd.f32 %v1012_v22, %v1004_v20  ;;  %1018 = vst [vmem:[#allocation7 + $0x8] sm:$0xff] %v1014_v59 }
 0x491   :  { %1019 = vst [vmem:[#allocation7 + $0x10] sm:$0xff] %v1015_v3 }
 0x492   :  { %1020 = vst [vmem:[#allocation7 + $0x18] sm:$0xff] %v1016_v5 }
 0x493   :  { %1375 = shalt.err (!%p1372_p12)
}
 0x494   :  { %s1376_s16 = scalar_lea.hbm %s2006_s4, 512 }
 0x495   :  { %p1377_p13 = scmp.ne.s32.totalorder %s2006_s4, %s1376_s16  ;;  %p1380_p0 = scmp.lt.u32.totalorder %s1376_s16, %s2006_s4 }
 0x497   :  { %p1382_p1 = pnand %p1380_p0, %p1377_p13 }
 0x499   :  { %1385 = shalt.err (!%p1382_p1)
}
 0x49a   :  { %1030 = dma.vmem_to_hbm [thread:$0]  %s1028_s12, 512, %s2006_s4, [#allocation6]  }
 0x49b   :  { %1388 = dma.done.wait [#allocation6], 512  }
 0x49c   :  { %1389 = vsyncadd [#allocation6], 4294966784 }
 0x49d   :  { %1034 = vsyncpa [#allocation5], 1 }
 0x49e   :  { %1035 = vsyncpa [#allocation6], 1 }

</bundles_post_ra>
